<compile_context>
chip_gen: v5e
topology: v5e:2x2
jax: 0.10.0
libtpu: 0.0.40
codegen_flags: <defaults>
</compile_context>

<pallas_src>
import jax
import jax.numpy as jnp
import numpy as np
from jax.experimental import pallas as pl
from jax.experimental.pallas import tpu as pltpu


def _estimator_kernel(x_ref,
                      w1_ref, b1_ref,
                      w2i_ref, b2i_ref,
                      wh_ref, bhn_ref,
                      w3_ref, b3_ref, w4_ref, b4_ref,
                      out_ref):
    B, _ = out_ref.shape
    Dp = bhn_ref.shape[1]              # lane-padded belief size (multiple of 128)
    T = x_ref.shape[0] // B
    md = w1_ref.dtype                  # matmul operand dtype (bf16)

    # ---- prologue (off the serial path): encoder layer1 + folded (enc2 · W_i) ----
    h1 = jnp.maximum(
        jnp.dot(x_ref[...], w1_ref[...], preferred_element_type=jnp.float32)
        + b1_ref[...], 0.0)                                            # (T*B, H) f32
    gi_all = jnp.dot(h1.astype(md), w2i_ref[...],
                     preferred_element_type=jnp.float32) + b2i_ref[...]  # (T*B, 3*Dp) f32

    wh = wh_ref[...]                                                   # (Dp, 3*Dp) bf16
    bhn = jnp.broadcast_to(bhn_ref[...], (B, Dp))                      # hoisted broadcast

    # ---- GRU recurrence: only h @ W_h + gate math on the per-step critical path ----
    # TODO(synk): on v5e/v6e keep W_h resident in the MXU across the unrolled steps via
    #   pltpu.matmul_push_rhs / matmul_acc_lhs / matmul_pop (verify from the bundle dump
    #   whether Mosaic already hoists the RHS push); on v7x accumulate gh onto gi in the
    #   MRB instead of the VPU add.
    h = jnp.zeros((B, Dp), jnp.float32)
    for t in range(T):                                  # static unroll, static slices
        gi = gi_all[t * B:(t + 1) * B, :]               # (B, 3*Dp)
        gh = jnp.dot(h.astype(md), wh,
                     preferred_element_type=jnp.float32)  # (B, 3*Dp)
        rz = jax.nn.sigmoid(gi[:, :2 * Dp] + gh[:, :2 * Dp])   # one EUP pass for r|z
        r = rz[:, :Dp]
        z = rz[:, Dp:]
        n = jnp.tanh(gi[:, 2 * Dp:] + r * (gh[:, 2 * Dp:] + bhn))
        h = n + z * (h - n)                             # PyTorch GRUCell update form

    # ---- decoder: Linear -> ReLU -> Linear, single output store ----
    d1 = jnp.maximum(
        jnp.dot(h.astype(md), w3_ref[...], preferred_element_type=jnp.float32)
        + b3_ref[...], 0.0)
    out_ref[...] = (jnp.dot(d1.astype(md), w4_ref[...],
                            preferred_element_type=jnp.float32)
                    + b4_ref[...]).astype(out_ref.dtype)
    # TODO(synk): if 2*zeta_size grows, pad the output (and w4 columns) to a 128-lane
    # multiple for an unmasked vst and slice in the wrapper.


def rnn_estimator_forward(obs, act, params, *, zeta_size, min_std=1e-4,
                          use_act=False, matmul_dtype=jnp.bfloat16):
    """Pallas implementation of RNNEstimator.forward -> (means, stds)."""
    # Glue (pure JAX): delta features, exactly as the PyTorch forward.
    delta_pos = obs[:-1, :, 3:5] - obs[1:, :, 3:5]
    delta_vel = obs[:-1, :, 6:8] - obs[1:, :, 6:8]
    x = jnp.concatenate((delta_pos, delta_vel), axis=-1)               # (T, B, 4)
    if use_act:
        x = jnp.concatenate((x, act[:-1]), axis=-1)
    x = x.astype(jnp.float32)
    T, B, F = x.shape

    p = params
    hidden = p["w1"].shape[1]
    D = p["w2"].shape[1]               # belief_size
    Z2 = p["w4"].shape[1]              # 2 * zeta_size
    Dp = ((D + 127) // 128) * 128      # lane-padded gate width (128-lane slabs)
    hi = jax.lax.Precision.HIGHEST

    # Pad feature dim to a full lane width (zero rows of w1 keep math identical).
    Fp = ((F + 127) // 128) * 128
    x_p = jnp.pad(x, ((0, 0), (0, 0), (0, Fp - F))).reshape(T * B, Fp)
    w1_p = jnp.pad(p["w1"], ((0, Fp - F), (0, 0)))

    # Lane-align each GRU gate into its own 128-lane slab: [ r | z | n ], width Dp each.
    pad_w = lambda w: jnp.pad(w, ((0, 0), (0, Dp - D)))                # (in, D)->(in, Dp)
    pad_b = lambda b: jnp.pad(b, (0, Dp - D))                          # (D,)  ->(Dp,)
    w_i = jnp.concatenate([pad_w(p["w_ir"]), pad_w(p["w_iz"]), pad_w(p["w_in"])], axis=1)
    w_h = jnp.concatenate([pad_w(p["w_hr"]), pad_w(p["w_hz"]), pad_w(p["w_hn"])], axis=1)
    w_h = jnp.pad(w_h, ((0, Dp - D), (0, 0)))                          # (Dp, 3*Dp)

    # Fold encoder layer 2 into the input-gate projection (f32, before bf16 cast) and
    # pre-sum the r/z biases; keep b_hn separate (it is scaled by r inside the cell).
    b_gate = jnp.concatenate([pad_b(p["b_ir"] + p["b_hr"]),
                              pad_b(p["b_iz"] + p["b_hz"]),
                              pad_b(p["b_in"])])                       # (3*Dp,)
    w2i = jnp.dot(p["w2"], w_i, precision=hi)                          # (hidden, 3*Dp)
    b2i = jnp.dot(p["b2"], w_i, precision=hi) + b_gate                 # (3*Dp,)
    b_hn = pad_b(p["b_hn"])                                            # (Dp,)

    w3_p = jnp.pad(p["w3"], ((0, Dp - D), (0, 0)))                     # (Dp, hidden)

    md = matmul_dtype
    row = lambda v: v.reshape(1, -1).astype(jnp.float32)
    x_md = x_p.astype(md)
    weights = [
        w1_p.astype(md), row(p["b1"]),
        w2i.astype(md), row(b2i),
        w_h.astype(md), row(b_hn),
        w3_p.astype(md), row(p["b3"]),
        p["w4"].astype(md), row(p["b4"]),
    ]

    def const_spec(a):
        return pl.BlockSpec(a.shape, lambda i: (0,) * a.ndim)

    raw = pl.pallas_call(
        _estimator_kernel,
        out_shape=jax.ShapeDtypeStruct((B, Z2), jnp.float32),
        grid_spec=pltpu.PrefetchScalarGridSpec(
            num_scalar_prefetch=0,
            grid=(1,),  # single invocation; whole problem fits trivially in VMEM
            in_specs=[const_spec(x_md)] + [const_spec(w) for w in weights],
            out_specs=pl.BlockSpec((B, Z2), lambda i: (0, 0)),
        ),
        compiler_params=pltpu.CompilerParams(
            dimension_semantics=("arbitrary",)),
        # TODO(synk): for large batch on v7x, add a leading "parallel" grid axis over
        # batch halves (time stays "arbitrary" per core) and size per-core blocks for
        # v7x's 64 MiB VMEM (not 128 MiB as on v5e/v6e).
    )(x_md, *weights)

    means = raw[:, :zeta_size]
    stds = min_std + jax.nn.softplus(raw[:, zeta_size:])
    return means, stds


def ref_forward(obs, act, p, *, min_std, use_act):
    """Pure-JAX f32 reference mirroring the PyTorch forward."""
    hi = jax.lax.Precision.HIGHEST
    mm = lambda a, b: jnp.dot(a, b, precision=hi)
    dp = obs[:-1, :, 3:5] - obs[1:, :, 3:5]
    dv = obs[:-1, :, 6:8] - obs[1:, :, 6:8]
    x = jnp.concatenate((dp, dv), -1)
    if use_act:
        x = jnp.concatenate((x, act[:-1]), -1)
    T, B, _ = x.shape
    embeds = mm(jax.nn.relu(mm(x, p["w1"]) + p["b1"]), p["w2"]) + p["b2"]
    h = jnp.zeros((B, p["w2"].shape[1]), jnp.float32)
    for t in range(T):
        e = embeds[t]
        r = jax.nn.sigmoid(mm(e, p["w_ir"]) + p["b_ir"] + mm(h, p["w_hr"]) + p["b_hr"])
        z = jax.nn.sigmoid(mm(e, p["w_iz"]) + p["b_iz"] + mm(h, p["w_hz"]) + p["b_hz"])
        n = jnp.tanh(mm(e, p["w_in"]) + p["b_in"] + r * (mm(h, p["w_hn"]) + p["b_hn"]))
        h = n + z * (h - n)          # PyTorch GRUCell update form
    out = mm(jax.nn.relu(mm(h, p["w3"]) + p["b3"]), p["w4"]) + p["b4"]
    Z = out.shape[-1] // 2
    return out[:, :Z], min_std + jax.nn.softplus(out[:, Z:])


def init_params(key, obs_size, hidden_size, belief_size, zeta_size):
    """Deterministic uniform(-1/sqrt(fan_in)) init, PyTorch-like shapes (transposed)."""
    def lin(k, fan_in, fan_out):
        kw, kb = jax.random.split(k)
        s = 1.0 / np.sqrt(fan_in)
        return (jax.random.uniform(kw, (fan_in, fan_out), jnp.float32, -s, s),
                jax.random.uniform(kb, (fan_out,), jnp.float32, -s, s))

    keys = jax.random.split(key, 12)
    p = {}
    p["w1"], p["b1"] = lin(keys[0], obs_size, hidden_size)
    p["w2"], p["b2"] = lin(keys[1], hidden_size, belief_size)
    p["w_ir"], p["b_ir"] = lin(keys[2], belief_size, belief_size)
    p["w_iz"], p["b_iz"] = lin(keys[3], belief_size, belief_size)
    p["w_in"], p["b_in"] = lin(keys[4], belief_size, belief_size)
    p["w_hr"], p["b_hr"] = lin(keys[5], belief_size, belief_size)
    p["w_hz"], p["b_hz"] = lin(keys[6], belief_size, belief_size)
    p["w_hn"], p["b_hn"] = lin(keys[7], belief_size, belief_size)
    p["w3"], p["b3"] = lin(keys[8], belief_size, hidden_size)
    p["w4"], p["b4"] = lin(keys[9], hidden_size, 2 * zeta_size)
    return p


if __name__ == "__main__":
    # Small shapes consistent with the forward: obs (T+1, B, obs_dim>=8), act (T+1, B, act).
    T_plus_1, B, OBS_DIM, ACT_SIZE = 9, 8, 10, 3
    BELIEF, HIDDEN, ZETA = 32, 32, 4
    MIN_STD = 1e-4
    USE_ACT = False
    OBS_SIZE = 4  # effective encoder input: concat(delta_pos, delta_vel)

    key = jax.random.PRNGKey(0)
    k_obs, k_act, k_par = jax.random.split(key, 3)
    obs = jax.random.normal(k_obs, (T_plus_1, B, OBS_DIM), jnp.float32)
    act = jax.random.normal(k_act, (T_plus_1, B, ACT_SIZE), jnp.float32)
    params = init_params(k_par, OBS_SIZE, HIDDEN, BELIEF, ZETA)

    means, stds = rnn_estimator_forward(obs, act, params, zeta_size=ZETA,
                                        min_std=MIN_STD, use_act=USE_ACT)
    jax.block_until_ready((means, stds))

    # Check vs the exact f32 reference (difference = bf16 matmul rounding only).
    rm, rs = ref_forward(obs, act, params, min_std=MIN_STD, use_act=USE_ACT)
    np.testing.assert_allclose(np.asarray(means), np.asarray(rm), rtol=5e-2, atol=5e-2)
    np.testing.assert_allclose(np.asarray(stds), np.asarray(rs), rtol=5e-2, atol=5e-2)

    assert means.shape == (B, ZETA) and stds.shape == (B, ZETA)
    assert bool(jnp.all(jnp.isfinite(means))) and bool(jnp.all(stds > 0))

    print("KERNEL_OK")
</pallas_src>

<mosaic_0001>
module attributes {stable_mosaic.version = 11 : i64} {
  func.func @_estimator_kernel(%arg0: i32, %arg1: memref<64x128xbf16, #tpu.memory_space<vmem>>, %arg2: memref<128x32xbf16, #tpu.memory_space<vmem>>, %arg3: memref<1x32xf32, #tpu.memory_space<vmem>>, %arg4: memref<32x384xbf16, #tpu.memory_space<vmem>>, %arg5: memref<1x384xf32, #tpu.memory_space<vmem>>, %arg6: memref<128x384xbf16, #tpu.memory_space<vmem>>, %arg7: memref<1x128xf32, #tpu.memory_space<vmem>>, %arg8: memref<128x32xbf16, #tpu.memory_space<vmem>>, %arg9: memref<1x32xf32, #tpu.memory_space<vmem>>, %arg10: memref<32x8xbf16, #tpu.memory_space<vmem>>, %arg11: memref<1x8xf32, #tpu.memory_space<vmem>>, %arg12: memref<8x8xf32, #tpu.memory_space<vmem>>) attributes {dimension_semantics = [#tpu.dimension_semantics<arbitrary>], iteration_bounds = array<i64: 1>, scalar_prefetch = 0 : i64, scratch_operands = 0 : i64, tpu.core_type = #tpu.core_type<tc>, window_params = [{pipeline_mode = #tpu.pipeline_mode<synchronous>, transform_indices = @transform_0, window_bounds = array<i64: 64, 128>}, {pipeline_mode = #tpu.pipeline_mode<synchronous>, transform_indices = @transform_1, window_bounds = array<i64: 128, 32>}, {pipeline_mode = #tpu.pipeline_mode<synchronous>, transform_indices = @transform_2, window_bounds = array<i64: 1, 32>}, {pipeline_mode = #tpu.pipeline_mode<synchronous>, transform_indices = @transform_3, window_bounds = array<i64: 32, 384>}, {pipeline_mode = #tpu.pipeline_mode<synchronous>, transform_indices = @transform_4, window_bounds = array<i64: 1, 384>}, {pipeline_mode = #tpu.pipeline_mode<synchronous>, transform_indices = @transform_5, window_bounds = array<i64: 128, 384>}, {pipeline_mode = #tpu.pipeline_mode<synchronous>, transform_indices = @transform_6, window_bounds = array<i64: 1, 128>}, {pipeline_mode = #tpu.pipeline_mode<synchronous>, transform_indices = @transform_7, window_bounds = array<i64: 128, 32>}, {pipeline_mode = #tpu.pipeline_mode<synchronous>, transform_indices = @transform_8, window_bounds = array<i64: 1, 32>}, {pipeline_mode = #tpu.pipeline_mode<synchronous>, transform_indices = @transform_9, window_bounds = array<i64: 32, 8>}, {pipeline_mode = #tpu.pipeline_mode<synchronous>, transform_indices = @transform_10, window_bounds = array<i64: 1, 8>}, {pipeline_mode = #tpu.pipeline_mode<synchronous>, transform_indices = @transform_11, window_bounds = array<i64: 8, 8>}]} {
    %c0 = arith.constant 0 : index
    %c0_0 = arith.constant 0 : index
    %0 = vector.load %arg1[%c0, %c0_0] : memref<64x128xbf16, #tpu.memory_space<vmem>>, vector<64x128xbf16>
    %c0_1 = arith.constant 0 : index
    %c0_2 = arith.constant 0 : index
    %1 = vector.load %arg2[%c0_1, %c0_2] : memref<128x32xbf16, #tpu.memory_space<vmem>>, vector<128x32xbf16>
    %cst = arith.constant dense<0.000000e+00> : vector<64x32xf32>
    %2 = tpu.matmul %0, %1, %cst {dimension_numbers = #tpu.dot_dimension_numbers<[1], [0], [0], [1], [0, 0, 1, 1], [], []>} : vector<64x128xbf16>, vector<128x32xbf16>, vector<64x32xf32> -> vector<64x32xf32>
    %c0_3 = arith.constant 0 : index
    %c0_4 = arith.constant 0 : index
    %3 = vector.load %arg3[%c0_3, %c0_4] : memref<1x32xf32, #tpu.memory_space<vmem>>, vector<1x32xf32>
    %4 = vector.broadcast %3 : vector<1x32xf32> to vector<64x32xf32>
    %5 = arith.addf %2, %4 : vector<64x32xf32>
    %cst_5 = arith.constant 0.000000e+00 : f32
    %6 = vector.broadcast %cst_5 : f32 to vector<64x32xf32>
    %7 = arith.maximumf %5, %6 : vector<64x32xf32>
    %8 = arith.truncf %7 : vector<64x32xf32> to vector<64x32xbf16>
    %c0_6 = arith.constant 0 : index
    %c0_7 = arith.constant 0 : index
    %9 = vector.load %arg4[%c0_6, %c0_7] : memref<32x384xbf16, #tpu.memory_space<vmem>>, vector<32x384xbf16>
    %cst_8 = arith.constant dense<0.000000e+00> : vector<64x384xf32>
    %10 = tpu.matmul %8, %9, %cst_8 {dimension_numbers = #tpu.dot_dimension_numbers<[1], [0], [0], [1], [0, 0, 1, 1], [], []>} : vector<64x32xbf16>, vector<32x384xbf16>, vector<64x384xf32> -> vector<64x384xf32>
    %c0_9 = arith.constant 0 : index
    %c0_10 = arith.constant 0 : index
    %11 = vector.load %arg5[%c0_9, %c0_10] : memref<1x384xf32, #tpu.memory_space<vmem>>, vector<1x384xf32>
    %12 = vector.broadcast %11 : vector<1x384xf32> to vector<64x384xf32>
    %13 = arith.addf %10, %12 : vector<64x384xf32>
    %c0_11 = arith.constant 0 : index
    %c0_12 = arith.constant 0 : index
    %14 = vector.load %arg6[%c0_11, %c0_12] : memref<128x384xbf16, #tpu.memory_space<vmem>>, vector<128x384xbf16>
    %c0_13 = arith.constant 0 : index
    %c0_14 = arith.constant 0 : index
    %15 = vector.load %arg7[%c0_13, %c0_14] : memref<1x128xf32, #tpu.memory_space<vmem>>, vector<1x128xf32>
    %16 = vector.shape_cast %15 : vector<1x128xf32> to vector<1x128xf32>
    %17 = vector.broadcast %16 : vector<1x128xf32> to vector<8x128xf32>
    %cst_15 = arith.constant 0.000000e+00 : f32
    %18 = vector.broadcast %cst_15 : f32 to vector<8x128xf32>
    %19 = vector.extract_strided_slice %13 {offsets = [0, 0], sizes = [8, 384], strides = [1, 1]} : vector<64x384xf32> to vector<8x384xf32>
    %20 = arith.truncf %18 : vector<8x128xf32> to vector<8x128xbf16>
    %cst_16 = arith.constant dense<0.000000e+00> : vector<8x384xf32>
    %21 = tpu.matmul %20, %14, %cst_16 {dimension_numbers = #tpu.dot_dimension_numbers<[1], [0], [0], [1], [0, 0, 1, 1], [], []>} : vector<8x128xbf16>, vector<128x384xbf16>, vector<8x384xf32> -> vector<8x384xf32>
    %22 = vector.extract_strided_slice %19 {offsets = [0, 0], sizes = [8, 256], strides = [1, 1]} : vector<8x384xf32> to vector<8x256xf32>
    %23 = vector.extract_strided_slice %21 {offsets = [0, 0], sizes = [8, 256], strides = [1, 1]} : vector<8x384xf32> to vector<8x256xf32>
    %24 = arith.addf %22, %23 : vector<8x256xf32>
    %25 = arith.negf %24 : vector<8x256xf32>
    %26 = math.exp %25 : vector<8x256xf32>
    %cst_17 = arith.constant 1.000000e+00 : f32
    %27 = vector.broadcast %cst_17 : f32 to vector<8x256xf32>
    %28 = arith.addf %27, %26 : vector<8x256xf32>
    %29 = arith.divf %27, %28 : vector<8x256xf32>
    %30 = vector.extract_strided_slice %29 {offsets = [0, 0], sizes = [8, 128], strides = [1, 1]} : vector<8x256xf32> to vector<8x128xf32>
    %31 = vector.extract_strided_slice %29 {offsets = [0, 128], sizes = [8, 128], strides = [1, 1]} : vector<8x256xf32> to vector<8x128xf32>
    %32 = vector.extract_strided_slice %19 {offsets = [0, 256], sizes = [8, 128], strides = [1, 1]} : vector<8x384xf32> to vector<8x128xf32>
    %33 = vector.extract_strided_slice %21 {offsets = [0, 256], sizes = [8, 128], strides = [1, 1]} : vector<8x384xf32> to vector<8x128xf32>
    %34 = arith.addf %33, %17 : vector<8x128xf32>
    %35 = arith.mulf %30, %34 : vector<8x128xf32>
    %36 = arith.addf %32, %35 : vector<8x128xf32>
    %37 = math.tanh %36 : vector<8x128xf32>
    %38 = arith.subf %18, %37 : vector<8x128xf32>
    %39 = arith.mulf %31, %38 : vector<8x128xf32>
    %40 = arith.addf %37, %39 : vector<8x128xf32>
    %41 = vector.extract_strided_slice %13 {offsets = [8, 0], sizes = [8, 384], strides = [1, 1]} : vector<64x384xf32> to vector<8x384xf32>
    %42 = arith.truncf %40 : vector<8x128xf32> to vector<8x128xbf16>
    %cst_18 = arith.constant dense<0.000000e+00> : vector<8x384xf32>
    %43 = tpu.matmul %42, %14, %cst_18 {dimension_numbers = #tpu.dot_dimension_numbers<[1], [0], [0], [1], [0, 0, 1, 1], [], []>} : vector<8x128xbf16>, vector<128x384xbf16>, vector<8x384xf32> -> vector<8x384xf32>
    %44 = vector.extract_strided_slice %41 {offsets = [0, 0], sizes = [8, 256], strides = [1, 1]} : vector<8x384xf32> to vector<8x256xf32>
    %45 = vector.extract_strided_slice %43 {offsets = [0, 0], sizes = [8, 256], strides = [1, 1]} : vector<8x384xf32> to vector<8x256xf32>
    %46 = arith.addf %44, %45 : vector<8x256xf32>
    %47 = arith.negf %46 : vector<8x256xf32>
    %48 = math.exp %47 : vector<8x256xf32>
    %cst_19 = arith.constant 1.000000e+00 : f32
    %49 = vector.broadcast %cst_19 : f32 to vector<8x256xf32>
    %50 = arith.addf %49, %48 : vector<8x256xf32>
    %51 = arith.divf %49, %50 : vector<8x256xf32>
    %52 = vector.extract_strided_slice %51 {offsets = [0, 0], sizes = [8, 128], strides = [1, 1]} : vector<8x256xf32> to vector<8x128xf32>
    %53 = vector.extract_strided_slice %51 {offsets = [0, 128], sizes = [8, 128], strides = [1, 1]} : vector<8x256xf32> to vector<8x128xf32>
    %54 = vector.extract_strided_slice %41 {offsets = [0, 256], sizes = [8, 128], strides = [1, 1]} : vector<8x384xf32> to vector<8x128xf32>
    %55 = vector.extract_strided_slice %43 {offsets = [0, 256], sizes = [8, 128], strides = [1, 1]} : vector<8x384xf32> to vector<8x128xf32>
    %56 = arith.addf %55, %17 : vector<8x128xf32>
    %57 = arith.mulf %52, %56 : vector<8x128xf32>
    %58 = arith.addf %54, %57 : vector<8x128xf32>
    %59 = math.tanh %58 : vector<8x128xf32>
    %60 = arith.subf %40, %59 : vector<8x128xf32>
    %61 = arith.mulf %53, %60 : vector<8x128xf32>
    %62 = arith.addf %59, %61 : vector<8x128xf32>
    %63 = vector.extract_strided_slice %13 {offsets = [16, 0], sizes = [8, 384], strides = [1, 1]} : vector<64x384xf32> to vector<8x384xf32>
    %64 = arith.truncf %62 : vector<8x128xf32> to vector<8x128xbf16>
    %cst_20 = arith.constant dense<0.000000e+00> : vector<8x384xf32>
    %65 = tpu.matmul %64, %14, %cst_20 {dimension_numbers = #tpu.dot_dimension_numbers<[1], [0], [0], [1], [0, 0, 1, 1], [], []>} : vector<8x128xbf16>, vector<128x384xbf16>, vector<8x384xf32> -> vector<8x384xf32>
    %66 = vector.extract_strided_slice %63 {offsets = [0, 0], sizes = [8, 256], strides = [1, 1]} : vector<8x384xf32> to vector<8x256xf32>
    %67 = vector.extract_strided_slice %65 {offsets = [0, 0], sizes = [8, 256], strides = [1, 1]} : vector<8x384xf32> to vector<8x256xf32>
    %68 = arith.addf %66, %67 : vector<8x256xf32>
    %69 = arith.negf %68 : vector<8x256xf32>
    %70 = math.exp %69 : vector<8x256xf32>
    %cst_21 = arith.constant 1.000000e+00 : f32
    %71 = vector.broadcast %cst_21 : f32 to vector<8x256xf32>
    %72 = arith.addf %71, %70 : vector<8x256xf32>
    %73 = arith.divf %71, %72 : vector<8x256xf32>
    %74 = vector.extract_strided_slice %73 {offsets = [0, 0], sizes = [8, 128], strides = [1, 1]} : vector<8x256xf32> to vector<8x128xf32>
    %75 = vector.extract_strided_slice %73 {offsets = [0, 128], sizes = [8, 128], strides = [1, 1]} : vector<8x256xf32> to vector<8x128xf32>
    %76 = vector.extract_strided_slice %63 {offsets = [0, 256], sizes = [8, 128], strides = [1, 1]} : vector<8x384xf32> to vector<8x128xf32>
    %77 = vector.extract_strided_slice %65 {offsets = [0, 256], sizes = [8, 128], strides = [1, 1]} : vector<8x384xf32> to vector<8x128xf32>
    %78 = arith.addf %77, %17 : vector<8x128xf32>
    %79 = arith.mulf %74, %78 : vector<8x128xf32>
    %80 = arith.addf %76, %79 : vector<8x128xf32>
    %81 = math.tanh %80 : vector<8x128xf32>
    %82 = arith.subf %62, %81 : vector<8x128xf32>
    %83 = arith.mulf %75, %82 : vector<8x128xf32>
    %84 = arith.addf %81, %83 : vector<8x128xf32>
    %85 = vector.extract_strided_slice %13 {offsets = [24, 0], sizes = [8, 384], strides = [1, 1]} : vector<64x384xf32> to vector<8x384xf32>
    %86 = arith.truncf %84 : vector<8x128xf32> to vector<8x128xbf16>
    %cst_22 = arith.constant dense<0.000000e+00> : vector<8x384xf32>
    %87 = tpu.matmul %86, %14, %cst_22 {dimension_numbers = #tpu.dot_dimension_numbers<[1], [0], [0], [1], [0, 0, 1, 1], [], []>} : vector<8x128xbf16>, vector<128x384xbf16>, vector<8x384xf32> -> vector<8x384xf32>
    %88 = vector.extract_strided_slice %85 {offsets = [0, 0], sizes = [8, 256], strides = [1, 1]} : vector<8x384xf32> to vector<8x256xf32>
    %89 = vector.extract_strided_slice %87 {offsets = [0, 0], sizes = [8, 256], strides = [1, 1]} : vector<8x384xf32> to vector<8x256xf32>
    %90 = arith.addf %88, %89 : vector<8x256xf32>
    %91 = arith.negf %90 : vector<8x256xf32>
    %92 = math.exp %91 : vector<8x256xf32>
    %cst_23 = arith.constant 1.000000e+00 : f32
    %93 = vector.broadcast %cst_23 : f32 to vector<8x256xf32>
    %94 = arith.addf %93, %92 : vector<8x256xf32>
    %95 = arith.divf %93, %94 : vector<8x256xf32>
    %96 = vector.extract_strided_slice %95 {offsets = [0, 0], sizes = [8, 128], strides = [1, 1]} : vector<8x256xf32> to vector<8x128xf32>
    %97 = vector.extract_strided_slice %95 {offsets = [0, 128], sizes = [8, 128], strides = [1, 1]} : vector<8x256xf32> to vector<8x128xf32>
    %98 = vector.extract_strided_slice %85 {offsets = [0, 256], sizes = [8, 128], strides = [1, 1]} : vector<8x384xf32> to vector<8x128xf32>
    %99 = vector.extract_strided_slice %87 {offsets = [0, 256], sizes = [8, 128], strides = [1, 1]} : vector<8x384xf32> to vector<8x128xf32>
    %100 = arith.addf %99, %17 : vector<8x128xf32>
    %101 = arith.mulf %96, %100 : vector<8x128xf32>
    %102 = arith.addf %98, %101 : vector<8x128xf32>
    %103 = math.tanh %102 : vector<8x128xf32>
    %104 = arith.subf %84, %103 : vector<8x128xf32>
    %105 = arith.mulf %97, %104 : vector<8x128xf32>
    %106 = arith.addf %103, %105 : vector<8x128xf32>
    %107 = vector.extract_strided_slice %13 {offsets = [32, 0], sizes = [8, 384], strides = [1, 1]} : vector<64x384xf32> to vector<8x384xf32>
    %108 = arith.truncf %106 : vector<8x128xf32> to vector<8x128xbf16>
    %cst_24 = arith.constant dense<0.000000e+00> : vector<8x384xf32>
    %109 = tpu.matmul %108, %14, %cst_24 {dimension_numbers = #tpu.dot_dimension_numbers<[1], [0], [0], [1], [0, 0, 1, 1], [], []>} : vector<8x128xbf16>, vector<128x384xbf16>, vector<8x384xf32> -> vector<8x384xf32>
    %110 = vector.extract_strided_slice %107 {offsets = [0, 0], sizes = [8, 256], strides = [1, 1]} : vector<8x384xf32> to vector<8x256xf32>
    %111 = vector.extract_strided_slice %109 {offsets = [0, 0], sizes = [8, 256], strides = [1, 1]} : vector<8x384xf32> to vector<8x256xf32>
    %112 = arith.addf %110, %111 : vector<8x256xf32>
    %113 = arith.negf %112 : vector<8x256xf32>
    %114 = math.exp %113 : vector<8x256xf32>
    %cst_25 = arith.constant 1.000000e+00 : f32
    %115 = vector.broadcast %cst_25 : f32 to vector<8x256xf32>
    %116 = arith.addf %115, %114 : vector<8x256xf32>
    %117 = arith.divf %115, %116 : vector<8x256xf32>
    %118 = vector.extract_strided_slice %117 {offsets = [0, 0], sizes = [8, 128], strides = [1, 1]} : vector<8x256xf32> to vector<8x128xf32>
    %119 = vector.extract_strided_slice %117 {offsets = [0, 128], sizes = [8, 128], strides = [1, 1]} : vector<8x256xf32> to vector<8x128xf32>
    %120 = vector.extract_strided_slice %107 {offsets = [0, 256], sizes = [8, 128], strides = [1, 1]} : vector<8x384xf32> to vector<8x128xf32>
    %121 = vector.extract_strided_slice %109 {offsets = [0, 256], sizes = [8, 128], strides = [1, 1]} : vector<8x384xf32> to vector<8x128xf32>
    %122 = arith.addf %121, %17 : vector<8x128xf32>
    %123 = arith.mulf %118, %122 : vector<8x128xf32>
    %124 = arith.addf %120, %123 : vector<8x128xf32>
    %125 = math.tanh %124 : vector<8x128xf32>
    %126 = arith.subf %106, %125 : vector<8x128xf32>
    %127 = arith.mulf %119, %126 : vector<8x128xf32>
    %128 = arith.addf %125, %127 : vector<8x128xf32>
    %129 = vector.extract_strided_slice %13 {offsets = [40, 0], sizes = [8, 384], strides = [1, 1]} : vector<64x384xf32> to vector<8x384xf32>
    %130 = arith.truncf %128 : vector<8x128xf32> to vector<8x128xbf16>
    %cst_26 = arith.constant dense<0.000000e+00> : vector<8x384xf32>
    %131 = tpu.matmul %130, %14, %cst_26 {dimension_numbers = #tpu.dot_dimension_numbers<[1], [0], [0], [1], [0, 0, 1, 1], [], []>} : vector<8x128xbf16>, vector<128x384xbf16>, vector<8x384xf32> -> vector<8x384xf32>
    %132 = vector.extract_strided_slice %129 {offsets = [0, 0], sizes = [8, 256], strides = [1, 1]} : vector<8x384xf32> to vector<8x256xf32>
    %133 = vector.extract_strided_slice %131 {offsets = [0, 0], sizes = [8, 256], strides = [1, 1]} : vector<8x384xf32> to vector<8x256xf32>
    %134 = arith.addf %132, %133 : vector<8x256xf32>
    %135 = arith.negf %134 : vector<8x256xf32>
    %136 = math.exp %135 : vector<8x256xf32>
    %cst_27 = arith.constant 1.000000e+00 : f32
    %137 = vector.broadcast %cst_27 : f32 to vector<8x256xf32>
    %138 = arith.addf %137, %136 : vector<8x256xf32>
    %139 = arith.divf %137, %138 : vector<8x256xf32>
    %140 = vector.extract_strided_slice %139 {offsets = [0, 0], sizes = [8, 128], strides = [1, 1]} : vector<8x256xf32> to vector<8x128xf32>
    %141 = vector.extract_strided_slice %139 {offsets = [0, 128], sizes = [8, 128], strides = [1, 1]} : vector<8x256xf32> to vector<8x128xf32>
    %142 = vector.extract_strided_slice %129 {offsets = [0, 256], sizes = [8, 128], strides = [1, 1]} : vector<8x384xf32> to vector<8x128xf32>
    %143 = vector.extract_strided_slice %131 {offsets = [0, 256], sizes = [8, 128], strides = [1, 1]} : vector<8x384xf32> to vector<8x128xf32>
    %144 = arith.addf %143, %17 : vector<8x128xf32>
    %145 = arith.mulf %140, %144 : vector<8x128xf32>
    %146 = arith.addf %142, %145 : vector<8x128xf32>
    %147 = math.tanh %146 : vector<8x128xf32>
    %148 = arith.subf %128, %147 : vector<8x128xf32>
    %149 = arith.mulf %141, %148 : vector<8x128xf32>
    %150 = arith.addf %147, %149 : vector<8x128xf32>
    %151 = vector.extract_strided_slice %13 {offsets = [48, 0], sizes = [8, 384], strides = [1, 1]} : vector<64x384xf32> to vector<8x384xf32>
    %152 = arith.truncf %150 : vector<8x128xf32> to vector<8x128xbf16>
    %cst_28 = arith.constant dense<0.000000e+00> : vector<8x384xf32>
    %153 = tpu.matmul %152, %14, %cst_28 {dimension_numbers = #tpu.dot_dimension_numbers<[1], [0], [0], [1], [0, 0, 1, 1], [], []>} : vector<8x128xbf16>, vector<128x384xbf16>, vector<8x384xf32> -> vector<8x384xf32>
    %154 = vector.extract_strided_slice %151 {offsets = [0, 0], sizes = [8, 256], strides = [1, 1]} : vector<8x384xf32> to vector<8x256xf32>
    %155 = vector.extract_strided_slice %153 {offsets = [0, 0], sizes = [8, 256], strides = [1, 1]} : vector<8x384xf32> to vector<8x256xf32>
    %156 = arith.addf %154, %155 : vector<8x256xf32>
    %157 = arith.negf %156 : vector<8x256xf32>
    %158 = math.exp %157 : vector<8x256xf32>
    %cst_29 = arith.constant 1.000000e+00 : f32
    %159 = vector.broadcast %cst_29 : f32 to vector<8x256xf32>
    %160 = arith.addf %159, %158 : vector<8x256xf32>
    %161 = arith.divf %159, %160 : vector<8x256xf32>
    %162 = vector.extract_strided_slice %161 {offsets = [0, 0], sizes = [8, 128], strides = [1, 1]} : vector<8x256xf32> to vector<8x128xf32>
    %163 = vector.extract_strided_slice %161 {offsets = [0, 128], sizes = [8, 128], strides = [1, 1]} : vector<8x256xf32> to vector<8x128xf32>
    %164 = vector.extract_strided_slice %151 {offsets = [0, 256], sizes = [8, 128], strides = [1, 1]} : vector<8x384xf32> to vector<8x128xf32>
    %165 = vector.extract_strided_slice %153 {offsets = [0, 256], sizes = [8, 128], strides = [1, 1]} : vector<8x384xf32> to vector<8x128xf32>
    %166 = arith.addf %165, %17 : vector<8x128xf32>
    %167 = arith.mulf %162, %166 : vector<8x128xf32>
    %168 = arith.addf %164, %167 : vector<8x128xf32>
    %169 = math.tanh %168 : vector<8x128xf32>
    %170 = arith.subf %150, %169 : vector<8x128xf32>
    %171 = arith.mulf %163, %170 : vector<8x128xf32>
    %172 = arith.addf %169, %171 : vector<8x128xf32>
    %173 = vector.extract_strided_slice %13 {offsets = [56, 0], sizes = [8, 384], strides = [1, 1]} : vector<64x384xf32> to vector<8x384xf32>
    %174 = arith.truncf %172 : vector<8x128xf32> to vector<8x128xbf16>
    %cst_30 = arith.constant dense<0.000000e+00> : vector<8x384xf32>
    %175 = tpu.matmul %174, %14, %cst_30 {dimension_numbers = #tpu.dot_dimension_numbers<[1], [0], [0], [1], [0, 0, 1, 1], [], []>} : vector<8x128xbf16>, vector<128x384xbf16>, vector<8x384xf32> -> vector<8x384xf32>
    %176 = vector.extract_strided_slice %173 {offsets = [0, 0], sizes = [8, 256], strides = [1, 1]} : vector<8x384xf32> to vector<8x256xf32>
    %177 = vector.extract_strided_slice %175 {offsets = [0, 0], sizes = [8, 256], strides = [1, 1]} : vector<8x384xf32> to vector<8x256xf32>
    %178 = arith.addf %176, %177 : vector<8x256xf32>
    %179 = arith.negf %178 : vector<8x256xf32>
    %180 = math.exp %179 : vector<8x256xf32>
    %cst_31 = arith.constant 1.000000e+00 : f32
    %181 = vector.broadcast %cst_31 : f32 to vector<8x256xf32>
    %182 = arith.addf %181, %180 : vector<8x256xf32>
    %183 = arith.divf %181, %182 : vector<8x256xf32>
    %184 = vector.extract_strided_slice %183 {offsets = [0, 0], sizes = [8, 128], strides = [1, 1]} : vector<8x256xf32> to vector<8x128xf32>
    %185 = vector.extract_strided_slice %183 {offsets = [0, 128], sizes = [8, 128], strides = [1, 1]} : vector<8x256xf32> to vector<8x128xf32>
    %186 = vector.extract_strided_slice %173 {offsets = [0, 256], sizes = [8, 128], strides = [1, 1]} : vector<8x384xf32> to vector<8x128xf32>
    %187 = vector.extract_strided_slice %175 {offsets = [0, 256], sizes = [8, 128], strides = [1, 1]} : vector<8x384xf32> to vector<8x128xf32>
    %188 = arith.addf %187, %17 : vector<8x128xf32>
    %189 = arith.mulf %184, %188 : vector<8x128xf32>
    %190 = arith.addf %186, %189 : vector<8x128xf32>
    %191 = math.tanh %190 : vector<8x128xf32>
    %192 = arith.subf %172, %191 : vector<8x128xf32>
    %193 = arith.mulf %185, %192 : vector<8x128xf32>
    %194 = arith.addf %191, %193 : vector<8x128xf32>
    %195 = arith.truncf %194 : vector<8x128xf32> to vector<8x128xbf16>
    %c0_32 = arith.constant 0 : index
    %c0_33 = arith.constant 0 : index
    %196 = vector.load %arg8[%c0_32, %c0_33] : memref<128x32xbf16, #tpu.memory_space<vmem>>, vector<128x32xbf16>
    %cst_34 = arith.constant dense<0.000000e+00> : vector<8x32xf32>
    %197 = tpu.matmul %195, %196, %cst_34 {dimension_numbers = #tpu.dot_dimension_numbers<[1], [0], [0], [1], [0, 0, 1, 1], [], []>} : vector<8x128xbf16>, vector<128x32xbf16>, vector<8x32xf32> -> vector<8x32xf32>
    %c0_35 = arith.constant 0 : index
    %c0_36 = arith.constant 0 : index
    %198 = vector.load %arg9[%c0_35, %c0_36] : memref<1x32xf32, #tpu.memory_space<vmem>>, vector<1x32xf32>
    %199 = vector.broadcast %198 : vector<1x32xf32> to vector<8x32xf32>
    %200 = arith.addf %197, %199 : vector<8x32xf32>
    %cst_37 = arith.constant 0.000000e+00 : f32
    %201 = vector.broadcast %cst_37 : f32 to vector<8x32xf32>
    %202 = arith.maximumf %200, %201 : vector<8x32xf32>
    %203 = arith.truncf %202 : vector<8x32xf32> to vector<8x32xbf16>
    %c0_38 = arith.constant 0 : index
    %c0_39 = arith.constant 0 : index
    %204 = vector.load %arg10[%c0_38, %c0_39] : memref<32x8xbf16, #tpu.memory_space<vmem>>, vector<32x8xbf16>
    %cst_40 = arith.constant dense<0.000000e+00> : vector<8x8xf32>
    %205 = tpu.matmul %203, %204, %cst_40 {dimension_numbers = #tpu.dot_dimension_numbers<[1], [0], [0], [1], [0, 0, 1, 1], [], []>} : vector<8x32xbf16>, vector<32x8xbf16>, vector<8x8xf32> -> vector<8x8xf32>
    %c0_41 = arith.constant 0 : index
    %c0_42 = arith.constant 0 : index
    %206 = vector.load %arg11[%c0_41, %c0_42] : memref<1x8xf32, #tpu.memory_space<vmem>>, vector<1x8xf32>
    %207 = vector.broadcast %206 : vector<1x8xf32> to vector<8x8xf32>
    %208 = arith.addf %205, %207 : vector<8x8xf32>
    %c0_43 = arith.constant 0 : index
    %c0_44 = arith.constant 0 : index
    %209 = vector.load %arg12[%c0_43, %c0_44] : memref<8x8xf32, #tpu.memory_space<vmem>>, vector<8x8xf32>
    tpu.vector_store %arg12[%c0_43, %c0_44], %208 {strides = array<i32>} : memref<8x8xf32, #tpu.memory_space<vmem>>, vector<8x8xf32>,
    return
  }
  func.func @transform_0(%arg0: i32) -> (i32, i32) {
    %c0_i32 = arith.constant 0 : i32
    %c0_i32_0 = arith.constant 0 : i32
    %c0_i32_1 = arith.constant 0 : i32
    return %c0_i32, %c0_i32_0 : i32, i32
  }
  func.func @transform_1(%arg0: i32) -> (i32, i32) {
    %c0_i32 = arith.constant 0 : i32
    %c0_i32_0 = arith.constant 0 : i32
    %c0_i32_1 = arith.constant 0 : i32
    return %c0_i32, %c0_i32_0 : i32, i32
  }
  func.func @transform_2(%arg0: i32) -> (i32, i32) {
    %c0_i32 = arith.constant 0 : i32
    %c0_i32_0 = arith.constant 0 : i32
    %c0_i32_1 = arith.constant 0 : i32
    return %c0_i32, %c0_i32_0 : i32, i32
  }
  func.func @transform_3(%arg0: i32) -> (i32, i32) {
    %c0_i32 = arith.constant 0 : i32
    %c0_i32_0 = arith.constant 0 : i32
    %c0_i32_1 = arith.constant 0 : i32
    return %c0_i32, %c0_i32_0 : i32, i32
  }
  func.func @transform_4(%arg0: i32) -> (i32, i32) {
    %c0_i32 = arith.constant 0 : i32
    %c0_i32_0 = arith.constant 0 : i32
    %c0_i32_1 = arith.constant 0 : i32
    return %c0_i32, %c0_i32_0 : i32, i32
  }
  func.func @transform_5(%arg0: i32) -> (i32, i32) {
    %c0_i32 = arith.constant 0 : i32
    %c0_i32_0 = arith.constant 0 : i32
    %c0_i32_1 = arith.constant 0 : i32
    return %c0_i32, %c0_i32_0 : i32, i32
  }
  func.func @transform_6(%arg0: i32) -> (i32, i32) {
    %c0_i32 = arith.constant 0 : i32
    %c0_i32_0 = arith.constant 0 : i32
    %c0_i32_1 = arith.constant 0 : i32
    return %c0_i32, %c0_i32_0 : i32, i32
  }
  func.func @transform_7(%arg0: i32) -> (i32, i32) {
    %c0_i32 = arith.constant 0 : i32
    %c0_i32_0 = arith.constant 0 : i32
    %c0_i32_1 = arith.constant 0 : i32
    return %c0_i32, %c0_i32_0 : i32, i32
  }
  func.func @transform_8(%arg0: i32) -> (i32, i32) {
    %c0_i32 = arith.constant 0 : i32
    %c0_i32_0 = arith.constant 0 : i32
    %c0_i32_1 = arith.constant 0 : i32
    return %c0_i32, %c0_i32_0 : i32, i32
  }
  func.func @transform_9(%arg0: i32) -> (i32, i32) {
    %c0_i32 = arith.constant 0 : i32
    %c0_i32_0 = arith.constant 0 : i32
    %c0_i32_1 = arith.constant 0 : i32
    return %c0_i32, %c0_i32_0 : i32, i32
  }
  func.func @transform_10(%arg0: i32) -> (i32, i32) {
    %c0_i32 = arith.constant 0 : i32
    %c0_i32_0 = arith.constant 0 : i32
    %c0_i32_1 = arith.constant 0 : i32
    return %c0_i32, %c0_i32_0 : i32, i32
  }
  func.func @transform_11(%arg0: i32) -> (i32, i32) {
    %c0_i32 = arith.constant 0 : i32
    %c0_i32_0 = arith.constant 0 : i32
    %c0_i32_1 = arith.constant 0 : i32
    return %c0_i32, %c0_i32_0 : i32, i32
  }
}

</mosaic_0001>

<bundles_post_ra>
// kernel: tpu_custom_call.1
= control target key start
LH: loop header
LB: loop body
LE: loop exit
PB: predicated region body
PF: predicated region fallthrough
CT: control target
= control target key end

     0   :  { %16 = vsyncpa [#allocation3], 0  ;;  %s2343_s0 = inlined_call_operand.vmem [shape: bf16[64,128], index: 0, kind: input, shape index: {}]   ;;  %s2344_s1 = inlined_call_operand.vmem [shape: bf16[128,32], index: 1, kind: input, shape index: {}]   ;;  %s2345_s2 = inlined_call_operand.vmem [shape: f32[1,32], index: 2, kind: input, shape index: {}]   ;;  %s2346_s3 = inlined_call_operand.vmem [shape: bf16[32,384], index: 3, kind: input, shape index: {}]   ;;  %s2347_s4 = inlined_call_operand.vmem [shape: f32[1,384], index: 4, kind: input, shape index: {}]   ;;  %s2348_s5 = inlined_call_operand.hbm [shape: bf16[128,384], index: 5, kind: input, shape index: {}]   ;;  %s2349_s6 = inlined_call_operand.vmem [shape: f32[1,128], index: 6, kind: input, shape index: {}]   ;;  %s2350_s7 = inlined_call_operand.vmem [shape: bf16[128,32], index: 7, kind: input, shape index: {}]   ;;  %s2351_s8 = inlined_call_operand.vmem [shape: f32[1,32], index: 8, kind: input, shape index: {}]   ;;  %s2352_s9 = inlined_call_operand.vmem [shape: bf16[32,8], index: 9, kind: input, shape index: {}]   ;;  %s2353_s10 = inlined_call_operand.vmem [shape: f32[1,8], index: 10, kind: input, shape index: {}]   ;;  %s2354_s11 = inlined_call_operand.hbm [shape: f32[8,8], index: 11, kind: output, shape index: {}]  }
   0x1   :  { %17 = vsyncpa [#allocation4], 0  ;;  %s32_s19 = sshll.u32 %s2348_s5, 4  ;;  %s1774_s20 = smov [#allocation2]   ;;  %s33_s19 = int_to_ptr.hbm [resolvable:$true] %s32_s19 }
   0x2   :  { %s34_s21 = sshll.u32 %s1774_s20, 4  ;;  %s1775_s22 = smov 192   ;;  %s35_s21 = int_to_ptr.vmem [resolvable:$true] %s34_s21 }
   0x3   :  { %s1776_s23 = smov 12  }
   0x4   :  { %40 = dma.hbm_to_vmem [thread:$0]  %s33_s19, 3072, %s35_s21, [#allocation3], %s1775_s22, %s1775_s22, %s1776_s23  }
   0x5   :  { %1770 = dma.done.wait [#allocation3], 3072  }
   0x6   :  { %1771 = vsyncadd [#allocation3], 4294964224  ;;  %v1591_v0 = vld [vmem:[%s2344_s1 + $0x38] sm:$0xff]  ;;  %v1590_v1 = vld [vmem:[%s2344_s1 + $0x30] sm:$0xff]  ;;  %vm245_vm0 = vcmask 261120   ;;  %s1333_s14 = sshll.u32 %s2354_s11, 4  ;;  %s1334_s14 = int_to_ptr.hbm [resolvable:$true] %s1333_s14 }
   0x7   :  { %156 = vmatpush.bf16.msra.mxu0 %v1591_v0  ;;  %v1589_v2 = vld [vmem:[%s2344_s1 + $0x28] sm:$0xff]  ;;  %v1588_v3 = vld [vmem:[%s2344_s1 + $0x20] sm:$0xff]  ;;  %v1587_v4 = vld [vmem:[%s2344_s1 + $0x18] sm:$0xff] }
   0x8   :  { %v1586_v5 = vld [vmem:[%s2344_s1 + $0x10] sm:$0xff]  ;;  %v1585_v6 = vld [vmem:[%s2344_s1 + $0x8] sm:$0xff]  ;;  %v1584_v7 = vld [vmem:[%s2344_s1] sm:$0xff] }
   0x9   :  { %v1580_v8 = vld [vmem:[%s2343_s0] sm:$0xff]  ;;  %v1581_v9 = vld [vmem:[%s2343_s0 + $0x8] sm:$0xff]  ;;  %v1582_v10 = vld [vmem:[%s2343_s0 + $0x10] sm:$0xff] }
   0xa   :  { %v1583_v11 = vld [vmem:[%s2343_s0 + $0x18] sm:$0xff]  ;;  %v1596_v13 = vld [vmem:[%s2346_s3 + $0x20] sm:$0xf0]  ;;  %v1407_v16 = vld [vmem:[%s2346_s3 + $0x24] sm:$0xf0] }
   0xb   :  { %157 = vmatpush.bf16.msra.mxu0 %v1590_v1  ;;  %v1405_v12 = vld [vmem:[%s2346_s3 + $0x18] sm:$0xf]  ;;  %v1595_v14 = vld [vmem:[%s2346_s3 + $0x1c] sm:$0xf]  ;;  %v1413_v17 = vld [vmem:[%s2346_s3 + $0x20] sm:$0xf] }
   0xc   :  { %v1406_v15 = vor.u32 %v1596_v13, %v1405_v12  ;;  %v1597_v18 = vld [vmem:[%s2346_s3 + $0x28] sm:$0xf0]  ;;  %v1410_v19 = vor.u32 %v1595_v14, %v1407_v16  ;;  %v1393_v21 = vld [vmem:[%s2346_s3] sm:$0xf]  ;;  %v1592_v23 = vld [vmem:[%s2346_s3 + $0x4] sm:$0xf] }
   0xd   :  { %v1414_v20 = vor.u32 %v1597_v18, %v1413_v17  ;;  %v1593_v22 = vld [vmem:[%s2346_s3 + $0x8] sm:$0xf0]  ;;  %v1395_v25 = vld [vmem:[%s2346_s3 + $0xc] sm:$0xf0]  ;;  %v1401_v26 = vld [vmem:[%s2346_s3 + $0x8] sm:$0xf] }
   0xe   :  { %264 = vmatpush.bf16.msra.mxu1 %v1406_v15  ;;  %293 = vmatpush.bf16.msra.mxu2 %v1410_v19  ;;  %v1394_v24 = vor.u32 %v1593_v22, %v1393_v21  ;;  %v1594_v27 = vld [vmem:[%s2346_s3 + $0x10] sm:$0xf0]  ;;  %v1398_v28 = vor.u32 %v1592_v23, %v1395_v25  ;;  %v1513_v30 = vld [vmem:[#allocation2 + $0xa8] sm:$0xf]  ;;  %v1619_v33 = vld [vmem:[#allocation2 + $0xac] sm:$0xf] }
   0xf   :  { %158 = vmatpush.bf16.msra.mxu0 %v1589_v2  ;;  %322 = vmatpush.bf16.msra.mxu3 %v1414_v20  ;;  %v1402_v29 = vor.u32 %v1594_v27, %v1401_v26  ;;  %v1620_v31 = vld [vmem:[#allocation2 + $0xb0] sm:$0xf0]  ;;  %v1515_v34 = vld [vmem:[#allocation2 + $0xb4] sm:$0xf0]  ;;  %v1501_v35 = vld [vmem:[#allocation2 + $0x90] sm:$0xf] }
  0x10   :  { %v1914_v32 = vor.u32 %v1620_v31, %v1513_v30  ;;  %v1918_v36 = vor.u32 %v1619_v33, %v1515_v34  ;;  %v1617_v37 = vld [vmem:[#allocation2 + $0x98] sm:$0xf0]  ;;  %v1616_v39 = vld [vmem:[#allocation2 + $0x94] sm:$0xf]  ;;  %v1503_v40 = vld [vmem:[#allocation2 + $0x9c] sm:$0xf0] }
  0x11   :  { %v1920_v38 = vor.u32 %v1617_v37, %v1501_v35  ;;  %v1925_v41 = vor.u32 %v1616_v39, %v1503_v40  ;;  %v1489_v43 = vld [vmem:[#allocation2 + $0x78] sm:$0xf]  ;;  %v1614_v44 = vld [vmem:[#allocation2 + $0x80] sm:$0xf0]  ;;  %v1933_v46 = vld [vmem:[%s2345_s2] ss:$0 sm:$0xff] }
  0x12   :  { %265 = vmatpush.bf16.msra.mxu1 %v1394_v24  ;;  %294 = vmatpush.bf16.msra.mxu2 %v1398_v28  ;;  %v1928_v45 = vor.u32 %v1614_v44, %v1489_v43  ;;  %v1521_v47 = vld [vmem:[#allocation2 + $0xb0] sm:$0xf]  ;;  %v1621_v48 = vld [vmem:[#allocation2 + $0xb8] sm:$0xf0]  ;;  %v1491_v51 = vld [vmem:[#allocation2 + $0x84] sm:$0xf0] }
  0x13   :  { %159 = vmatpush.bf16.msra.mxu0 %v1588_v3  ;;  %323 = vmatpush.bf16.msra.mxu3 %v1402_v29  ;;  %v1937_v49 = vor.u32 %v1621_v48, %v1521_v47  ;;  %v1613_v50 = vld [vmem:[#allocation2 + $0x7c] sm:$0xf]  ;;  %v1477_v52 = vld [vmem:[#allocation2 + $0x60] sm:$0xf]  ;;  %v1611_v54 = vld [vmem:[#allocation2 + $0x68] sm:$0xf0] }
  0x14   :  { %v1939_v53 = vor.u32 %v1613_v50, %v1491_v51  ;;  %v1942_v55 = vor.u32 %v1611_v54, %v1477_v52  ;;  %v1509_v62 = vld [vmem:[#allocation2 + $0x98] sm:$0xf]  ;;  %v1618_v63 = vld [vmem:[#allocation2 + $0xa0] sm:$0xf0]  ;;  %v1479_v2 = vld [vmem:[#allocation2 + $0x6c] sm:$0xf0] }
  0x15   :  { %v1610_v0 = vld [vmem:[#allocation2 + $0x64] sm:$0xf]  ;;  %v1949_v1 = vor.u32 %v1618_v63, %v1509_v62  ;;  %v1467_v12 = vld [vmem:[#allocation2 + $0x54] sm:$0xf0]  ;;  %v1453_v13 = vld [vmem:[#allocation2 + $0x30] sm:$0xf] }
  0x16   :  { %509 = vmatpush.bf16.msrb.mxu1 %v1914_v32  ;;  %522 = vmatpush.bf16.msrb.mxu2 %v1918_v36  ;;  %v1953_v3 = vor.u32 %v1610_v0, %v1479_v2  ;;  %v1605_v15 = vld [vmem:[#allocation2 + $0x38] sm:$0xf0]  ;;  %v1485_v23 = vld [vmem:[#allocation2 + $0x68] sm:$0xf]  ;;  %v1612_v24 = vld [vmem:[#allocation2 + $0x70] sm:$0xf0] }
  0x17   :  { %160 = vmatpush.bf16.msra.mxu0 %v1587_v4  ;;  %535 = vmatpush.bf16.msrb.mxu3 %v1937_v49  ;;  %v1967_v16 = vor.u32 %v1605_v15, %v1453_v13  ;;  %v1604_v25 = vld [vmem:[#allocation2 + $0x34] sm:$0xf]  ;;  %v1974_v26 = vor.u32 %v1612_v24, %v1485_v23  ;;  %v1455_v27 = vld [vmem:[#allocation2 + $0x3c] sm:$0xf0]  ;;  %v1441_v30 = vld [vmem:[#allocation2 + $0x18] sm:$0xf] }
  0x18   :  { %v1978_v28 = vor.u32 %v1604_v25, %v1455_v27  ;;  %v1602_v31 = vld [vmem:[#allocation2 + $0x20] sm:$0xf0]  ;;  %v1473_v33 = vld [vmem:[#allocation2 + $0x50] sm:$0xf]  ;;  %v1609_v35 = vld [vmem:[#allocation2 + $0x58] sm:$0xf0] }
  0x19   :  { %v1983_v34 = vor.u32 %v1602_v31, %v1441_v30  ;;  %v1601_v37 = vld [vmem:[#allocation2 + $0x1c] sm:$0xf]  ;;  %v1443_v39 = vld [vmem:[#allocation2 + $0x24] sm:$0xf0]  ;;  %v1985_v40 = vor.u32 %v1609_v35, %v1473_v33  ;;  %v1429_v43 = vld [vmem:[#allocation2] sm:$0xf] }
  0x1a   :  { %510 = vmatpush.bf16.msrb.mxu1 %v1920_v38  ;;  %523 = vmatpush.bf16.msrb.mxu2 %v1925_v41  ;;  %v1599_v44 = vld [vmem:[#allocation2 + $0x8] sm:$0xf0]  ;;  %v1598_v47 = vld [vmem:[#allocation2 + $0x4] sm:$0xf]  ;;  %v1431_v50 = vld [vmem:[#allocation2 + $0xc] sm:$0xf0] }
  0x1b   :  { %161 = vmatpush.bf16.msra.mxu0 %v1586_v5  ;;  %v1465_v5 = vld [vmem:[#allocation2 + $0x48] sm:$0xf]  ;;  %536 = vmatpush.bf16.msrb.mxu3 %v1949_v1  ;;  %v1990_v48 = vor.u32 %v1599_v44, %v1429_v43  ;;  %v1461_v51 = vld [vmem:[#allocation2 + $0x38] sm:$0xf]  ;;  %v1606_v52 = vld [vmem:[#allocation2 + $0x40] sm:$0xf0]  ;;  %v1995_v54 = vor.u32 %v1598_v47, %v1431_v50 }
  0x1c   :  { %v1449_v63 = vld [vmem:[#allocation2 + $0x20] sm:$0xf]  ;;  %v1603_v0 = vld [vmem:[#allocation2 + $0x28] sm:$0xf0]  ;;  %v1437_v2 = vld [vmem:[#allocation2 + $0x8] sm:$0xf] }
  0x1e   :  { %511 = vmatpush.bf16.msrb.mxu1 %v1928_v45  ;;  %524 = vmatpush.bf16.msrb.mxu2 %v1939_v53 }
  0x1f   :  { %162 = vmatpush.bf16.msra.mxu0 %v1585_v6  ;;  %v1608_v6 = vld [vmem:[#allocation2 + $0x50] sm:$0xf0] }
  0x22   :  { %512 = vmatpush.bf16.msrb.mxu1 %v1942_v55  ;;  %525 = vmatpush.bf16.msrb.mxu2 %v1953_v3 }
  0x23   :  { %163 = vmatpush.bf16.msra.mxu0 %v1584_v7  ;;  %v1958_v7 = vor.u32 %v1608_v6, %v1465_v5  ;;  %v2014_v5 = vor.u32 %v1603_v0, %v1449_v63  ;;  %v1600_v6 = vld [vmem:[#allocation2 + $0x10] sm:$0xf0] }
  0x26   :  { %164 = vmatmul.bf16.vlgmr.msra.gmra.mxu0 %v1580_v8  ;;  %513 = vmatpush.bf16.msrb.mxu1 %v1958_v7  ;;  %v1497_v8 = vld [vmem:[#allocation2 + $0x80] sm:$0xf] }
  0x27   :  { %596 = vmatpush.bf16.msrb.mxu0 %v1914_v32 }
  0x2a   :  { %514 = vmatpush.bf16.msrb.mxu1 %v1967_v16 }
  0x2b   :  { %597 = vmatpush.bf16.msrb.mxu0 %v1920_v38 }
  0x2e   :  { %515 = vmatpush.bf16.msrb.mxu1 %v1983_v34 }
  0x2f   :  { %598 = vmatpush.bf16.msrb.mxu0 %v1928_v45 }
  0x32   :  { %516 = vmatpush.bf16.msrb.mxu1 %v1990_v48 }
  0x33   :  { %599 = vmatpush.bf16.msrb.mxu0 %v1942_v55 }
  0x36   :  { %169 = vmatmul.bf16.gmra.mxu0 %v1581_v9  ;;  %v1615_v9 = vld [vmem:[#allocation2 + $0x88] sm:$0xf0] }
  0x37   :  { %600 = vmatpush.bf16.msrb.mxu0 %v1958_v7 }
  0x3b   :  { %601 = vmatpush.bf16.msrb.mxu0 %v1967_v16 }
  0x3f   :  { %602 = vmatpush.bf16.msrb.mxu0 %v1983_v34 }
  0x43   :  { %603 = vmatpush.bf16.msrb.mxu0 %v1990_v48 }
  0x46   :  { %174 = vmatmul.bf16.gmra.mxu0 %v1582_v10  ;;  %v1962_v10 = vor.u32 %v1615_v9, %v1497_v8  ;;  %v2019_v8 = vor.u32 %v1600_v6, %v1437_v2 }
  0x47   :  { %696 = vmatpush.bf16.msra.mxu0 %v1918_v36 }
  0x48   :  { %537 = vmatpush.bf16.msrb.mxu3 %v1962_v10 }
  0x4b   :  { %697 = vmatpush.bf16.msra.mxu0 %v1925_v41 }
  0x4c   :  { %538 = vmatpush.bf16.msrb.mxu3 %v1974_v26 }
  0x4f   :  { %698 = vmatpush.bf16.msra.mxu0 %v1939_v53 }
  0x50   :  { %539 = vmatpush.bf16.msrb.mxu3 %v1985_v40 }
  0x53   :  { %699 = vmatpush.bf16.msra.mxu0 %v1953_v3 }
  0x56   :  { %179 = vmatmul.bf16.gmra.mxu0 %v1583_v11  ;;  %v1607_v11 = vld [vmem:[#allocation2 + $0x4c] sm:$0xf] }
  0x57   :  { %v1964_v14 = vor.u32 %v1607_v11, %v1467_v12 }
  0x59   :  { %526 = vmatpush.bf16.msrb.mxu2 %v1964_v14  ;;  %700 = vmatpush.bf16.msra.mxu0 %v1964_v14 }
  0x5d   :  { %527 = vmatpush.bf16.msrb.mxu2 %v1978_v28  ;;  %701 = vmatpush.bf16.msra.mxu0 %v1978_v28 }
  0xa3   :  { %v165_v42 = vpop.f32.mrf.mxu0 }
  0xa4   :  { %v166_v56 = vadd.f32 %v1933_v46, %v165_v42  ;;  %v1987_v42 = vor.u32 %v1601_v37, %v1443_v39 }
  0xa6   :  { %v185_v59 = vmax.f32 %v166_v56, 0.0  ;;  %528 = vmatpush.bf16.msrb.mxu2 %v1987_v42  ;;  %v1997_v56 = vor.u32 %v1606_v52, %v1461_v51  ;;  %702 = vmatpush.bf16.msra.mxu0 %v1987_v42 }
  0xa8   :  { %540 = vmatpush.bf16.msrb.mxu3 %v1997_v56 }
  0xaa   :  { %529 = vmatpush.bf16.msrb.mxu2 %v1995_v54  ;;  %703 = vmatpush.bf16.msra.mxu0 %v1995_v54 }
  0xab   :  { %v167_v57 = vpop.f32.mrf.mxu0 }
  0xac   :  { %v168_v58 = vadd.f32 %v1933_v46, %v167_v57  ;;  %541 = vmatpush.bf16.msrb.mxu3 %v2014_v5 }
  0xae   :  { %v186_v60 = vmax.f32 %v168_v58, 0.0 }
  0xb0   :  { %v193_v61 = vpack.c.bf16 %v186_v60, %v185_v59  ;;  %542 = vmatpush.bf16.msrb.mxu3 %v2019_v8 }
  0xb2   :  { %1415 = vmatmul.msk.bf16.vlgmr.msra.gmra.mxu1 %vm245_vm0, %v193_v61  ;;  %1419 = vmatmul.msk.bf16.vlgmr.msra.gmra.mxu2 %vm245_vm0, %v193_v61 }
  0xb3   :  { %1423 = vmatmul.msk.bf16.vlgmr.msra.gmra.mxu3 %vm245_vm0, %v193_v61  ;;  %v170_v4 = vpop.f32.mrf.mxu0  ;;  %609 = vmatpush.bf16.msra.mxu1 %v1918_v36 }
  0xb4   :  { %v171_v17 = vadd.f32 %v1933_v46, %v170_v4  ;;  %622 = vmatpush.bf16.msra.mxu2 %v1937_v49  ;;  %683 = vmatpush.bf16.msra.mxu3 %v1914_v32 }
  0xb6   :  { %v187_v20 = vmax.f32 %v171_v17, 0.0 }
  0xb7   :  { %610 = vmatpush.bf16.msra.mxu1 %v1925_v41 }
  0xb8   :  { %623 = vmatpush.bf16.msra.mxu2 %v1949_v1  ;;  %684 = vmatpush.bf16.msra.mxu3 %v1920_v38 }
  0xbb   :  { %v172_v18 = vpop.f32.mrf.mxu0  ;;  %611 = vmatpush.bf16.msra.mxu1 %v1939_v53 }
  0xbc   :  { %v173_v19 = vadd.f32 %v1933_v46, %v172_v18  ;;  %624 = vmatpush.bf16.msra.mxu2 %v1962_v10  ;;  %685 = vmatpush.bf16.msra.mxu3 %v1928_v45 }
  0xbe   :  { %v188_v21 = vmax.f32 %v173_v19, 0.0  ;;  %v205_v19 = vld [vmem:[%s2347_s4] sm:$0x7]  ;;  %s1778_s4 = smov [#allocation5]  }
  0xbf   :  { %612 = vmatpush.bf16.msra.mxu1 %v1953_v3  ;;  %v208_v25 = vperm.slane %v205_v19, 1  ;;  %v2082_v27 = vperm.slane %v205_v19, 2  ;;  %s1331_s30 = sshll.u32 %s1778_s4, 4  ;;  %s1332_s30 = int_to_ptr.vmem [resolvable:$true] %s1331_s30 }
  0xc0   :  { %v194_v22 = vpack.c.bf16 %v188_v21, %v187_v20  ;;  %625 = vmatpush.bf16.msra.mxu2 %v1974_v26  ;;  %686 = vmatpush.bf16.msra.mxu3 %v1942_v55  ;;  %v207_v21 = vperm.slane %v205_v19, 0 }
  0xc2   :  { %1416 = vmatmul.msk.bf16.gmra.mxu1 %vm245_vm0, %v194_v22  ;;  %1420 = vmatmul.msk.bf16.gmra.mxu2 %vm245_vm0, %v194_v22 }
  0xc3   :  { %1424 = vmatmul.msk.bf16.gmra.mxu3 %vm245_vm0, %v194_v22  ;;  %v175_v29 = vpop.f32.mrf.mxu0  ;;  %613 = vmatpush.bf16.msra.mxu1 %v1964_v14 }
  0xc4   :  { %v176_v57 = vadd.f32 %v1933_v46, %v175_v29  ;;  %626 = vmatpush.bf16.msra.mxu2 %v1985_v40  ;;  %687 = vmatpush.bf16.msra.mxu3 %v1958_v7 }
  0xc6   :  { %v189_v60 = vmax.f32 %v176_v57, 0.0 }
  0xc7   :  { %614 = vmatpush.bf16.msra.mxu1 %v1978_v28 }
  0xc8   :  { %627 = vmatpush.bf16.msra.mxu2 %v1997_v56  ;;  %688 = vmatpush.bf16.msra.mxu3 %v1967_v16 }
  0xcb   :  { %v177_v58 = vpop.f32.mrf.mxu0  ;;  %615 = vmatpush.bf16.msra.mxu1 %v1987_v42 }
  0xcc   :  { %v178_v59 = vadd.f32 %v1933_v46, %v177_v58  ;;  %628 = vmatpush.bf16.msra.mxu2 %v2014_v5  ;;  %689 = vmatpush.bf16.msra.mxu3 %v1983_v34 }
  0xce   :  { %v190_v61 = vmax.f32 %v178_v59, 0.0 }
  0xcf   :  { %616 = vmatpush.bf16.msra.mxu1 %v1995_v54 }
  0xd0   :  { %v195_v62 = vpack.c.bf16 %v190_v61, %v189_v60  ;;  %629 = vmatpush.bf16.msra.mxu2 %v2019_v8  ;;  %690 = vmatpush.bf16.msra.mxu3 %v1990_v48 }
  0xd2   :  { %1417 = vmatmul.msk.bf16.gmra.mxu1 %vm245_vm0, %v195_v62  ;;  %1421 = vmatmul.msk.bf16.gmra.mxu2 %vm245_vm0, %v195_v62 }
  0xd3   :  { %1425 = vmatmul.msk.bf16.gmra.mxu3 %vm245_vm0, %v195_v62  ;;  %v180_v4 = vpop.f32.mrf.mxu0 }
  0xd4   :  { %v181_v9 = vadd.f32 %v1933_v46, %v180_v4 }
  0xd6   :  { %v191_v13 = vmax.f32 %v181_v9, 0.0 }
  0xdb   :  { %v182_v11 = vpop.f32.mrf.mxu0 }
  0xdc   :  { %v183_v12 = vadd.f32 %v1933_v46, %v182_v11  ;;  %v1777_v46 = vmov 0  }
  0xde   :  { %v192_v15 = vmax.f32 %v183_v12, 0.0 }
  0xe0   :  { %v196_v17 = vpack.c.bf16 %v192_v15, %v191_v13 }
  0xe2   :  { %1418 = vmatmul.msk.bf16.gmra.mxu1 %vm245_vm0, %v196_v17  ;;  %1422 = vmatmul.msk.bf16.gmra.mxu2 %vm245_vm0, %v196_v17 }
  0xe3   :  { %1426 = vmatmul.msk.bf16.gmra.mxu3 %vm245_vm0, %v196_v17 }
  0xf2   :  { %517 = vmatmul.bf16.vlgmr.msrb.gmra.mxu1 %v1777_v46  ;;  %530 = vmatmul.bf16.vlgmr.msrb.gmra.mxu2 %v1777_v46 }
  0xf3   :  { %543 = vmatmul.bf16.vlgmr.msrb.gmra.mxu3 %v1777_v46  ;;  %709 = vmatpush.bf16.msrb.mxu1 %v1937_v49 }
  0xf4   :  { %770 = vmatpush.bf16.msrb.mxu2 %v1914_v32  ;;  %783 = vmatpush.bf16.msrb.mxu3 %v1918_v36 }
  0xf7   :  { %710 = vmatpush.bf16.msrb.mxu1 %v1949_v1 }
  0xf8   :  { %771 = vmatpush.bf16.msrb.mxu2 %v1920_v38  ;;  %784 = vmatpush.bf16.msrb.mxu3 %v1925_v41 }
  0xfb   :  { %711 = vmatpush.bf16.msrb.mxu1 %v1962_v10 }
  0xfc   :  { %772 = vmatpush.bf16.msrb.mxu2 %v1928_v45  ;;  %785 = vmatpush.bf16.msrb.mxu3 %v1939_v53 }
  0xff   :  { %712 = vmatpush.bf16.msrb.mxu1 %v1974_v26 }
 0x100   :  { %773 = vmatpush.bf16.msrb.mxu2 %v1942_v55  ;;  %786 = vmatpush.bf16.msrb.mxu3 %v1953_v3 }
 0x103   :  { %713 = vmatpush.bf16.msrb.mxu1 %v1985_v40 }
 0x104   :  { %774 = vmatpush.bf16.msrb.mxu2 %v1958_v7  ;;  %787 = vmatpush.bf16.msrb.mxu3 %v1964_v14 }
 0x107   :  { %714 = vmatpush.bf16.msrb.mxu1 %v1997_v56 }
 0x108   :  { %775 = vmatpush.bf16.msrb.mxu2 %v1967_v16  ;;  %788 = vmatpush.bf16.msrb.mxu3 %v1978_v28 }
 0x10b   :  { %715 = vmatpush.bf16.msrb.mxu1 %v2014_v5 }
 0x10c   :  { %776 = vmatpush.bf16.msrb.mxu2 %v1983_v34  ;;  %789 = vmatpush.bf16.msrb.mxu3 %v1987_v42 }
 0x10f   :  { %716 = vmatpush.bf16.msrb.mxu1 %v2019_v8 }
 0x110   :  { %777 = vmatpush.bf16.msrb.mxu2 %v1990_v48  ;;  %790 = vmatpush.bf16.msrb.mxu3 %v1995_v54 }
 0x12f   :  { %v267_v18 = vpop.f32.mrf.mxu1 }
 0x135   :  { %v296_v20 = vpop.f32.mrf.mxu2 }
 0x136   :  { %v2078_v22 = vpop.f32.mrf.mxu3 }
 0x137   :  { %v269_v23 = vpop.f32.mrf.mxu1 }
 0x138   :  { %v2080_v24 = vadd.f32 %v269_v23, %v207_v21 }
 0x13d   :  { %v298_v29 = vpop.f32.mrf.mxu2 }
 0x13e   :  { %v2084_v30 = vadd.f32 %v298_v29, %v208_v25  ;;  %v327_v31 = vpop.f32.mrf.mxu3 }
 0x13f   :  { %v2087_v33 = vadd.f32 %v327_v31, %v2082_v27  ;;  %v272_v35 = vpop.f32.mrf.mxu1 }
 0x140   :  { %v2089_v37 = vadd.f32 %v272_v35, %v207_v21 }
 0x145   :  { %v301_v39 = vpop.f32.mrf.mxu2 }
 0x146   :  { %v2091_v43 = vadd.f32 %v301_v39, %v208_v25  ;;  %v330_v44 = vpop.f32.mrf.mxu3 }
 0x147   :  { %v2094_v47 = vadd.f32 %v330_v44, %v2082_v27  ;;  %v274_v50 = vpop.f32.mrf.mxu1  ;;  %v268_v44 = vadd.f32 %v267_v18, %v207_v21 }
 0x148   :  { %v2096_v51 = vadd.f32 %v274_v50, %v207_v21 }
 0x14d   :  { %v303_v52 = vpop.f32.mrf.mxu2 }
 0x14e   :  { %v2098_v57 = vadd.f32 %v303_v52, %v208_v25  ;;  %v332_v58 = vpop.f32.mrf.mxu3 }
 0x14f   :  { %v2101_v59 = vadd.f32 %v332_v58, %v2082_v27  ;;  %v277_v60 = vpop.f32.mrf.mxu1 }
 0x150   :  { %v2103_v61 = vadd.f32 %v277_v60, %v207_v21 }
 0x155   :  { %v306_v62 = vpop.f32.mrf.mxu2 }
 0x156   :  { %v2105_v63 = vadd.f32 %v306_v62, %v208_v25  ;;  %v335_v0 = vpop.f32.mrf.mxu3 }
 0x157   :  { %v2108_v2 = vadd.f32 %v335_v0, %v2082_v27  ;;  %v279_v4 = vpop.f32.mrf.mxu1 }
 0x158   :  { %v2110_v6 = vadd.f32 %v279_v4, %v207_v21  ;;  %v297_v4 = vadd.f32 %v296_v20, %v208_v25  ;;  %v2134_v20 = vld [vmem:[%s2349_s6] ss:$0 sm:$0xff] }
 0x15d   :  { %v308_v9 = vpop.f32.mrf.mxu2 }
 0x15e   :  { %v2112_v11 = vadd.f32 %v308_v9, %v208_v25  ;;  %v337_v12 = vpop.f32.mrf.mxu3 }
 0x15f   :  { %v2115_v13 = vadd.f32 %v337_v12, %v2082_v27  ;;  %v282_v15 = vpop.f32.mrf.mxu1 }
 0x160   :  { %v2117_v17 = vadd.f32 %v282_v15, %v207_v21 }
 0x162   :  { %2355 = vst [vmem:[#allocation8_spill] sm:$0xff] %v2117_v17 }
 0x165   :  { %v311_v46 = vpop.f32.mrf.mxu2 }
 0x166   :  { %v2119_v19 = vadd.f32 %v311_v46, %v208_v25  ;;  %v340_v23 = vpop.f32.mrf.mxu3 }
 0x167   :  { %v2122_v29 = vadd.f32 %v340_v23, %v2082_v27  ;;  %v284_v31 = vpop.f32.mrf.mxu1 }
 0x168   :  { %v2124_v35 = vadd.f32 %v284_v31, %v207_v21 }
 0x169   :  { %2356 = vst [vmem:[#allocation9_spill] sm:$0xff] %v2122_v29 }
 0x16a   :  { %2357 = vst [vmem:[#allocation10_spill] sm:$0xff] %v2124_v35 }
 0x16d   :  { %v313_v39 = vpop.f32.mrf.mxu2 }
 0x16e   :  { %v2126_v50 = vadd.f32 %v313_v39, %v208_v25  ;;  %v342_v52 = vpop.f32.mrf.mxu3 }
 0x16f   :  { %v2129_v58 = vadd.f32 %v342_v52, %v2082_v27  ;;  %v518_v60 = vpop.f32.mrf.mxu1 }
 0x170   :  { %2358 = vst [vmem:[#allocation11_spill] sm:$0xff] %v2126_v50  ;;  %v548_v62 = vadd.f32 %v518_v60, %v268_v44 }
 0x171   :  { %2359 = vst [vmem:[#allocation12_spill] sm:$0xff] %v2129_v58 }
 0x172   :  { %v1523_v0 = vmul.f32 -1.442695, %v548_v62 }
 0x174   :  { %1641 = vpow2.f32 %v1523_v0 }
 0x175   :  { %v531_v9 = vpop.f32.mrf.mxu2 }
 0x176   :  { %v549_v12 = vadd.f32 %v531_v9, %v297_v4  ;;  %v544_v15 = vpop.f32.mrf.mxu3 }
 0x177   :  { %v520_v46 = vpop.f32.mrf.mxu1 }
 0x178   :  { %v1524_v23 = vmul.f32 -1.442695, %v549_v12  ;;  %v588_v12 = vadd.f32 %v2134_v20, %v544_v15 }
 0x17a   :  { %v1642_v31 = vpop.eup %1641  ;;  %1643 = vpow2.f32 %v1524_v23 }
 0x17b   :  { %v556_v35 = vadd.f32 1.0, %v1642_v31 }
 0x17d   :  { %1645 = vrcp.f32 %v556_v35  ;;  %v533_v18 = vpop.f32.mrf.mxu2  ;;  %v569_v44 = vand.u32 2147483648, %v556_v35  ;;  %v567_v62 = vand.u32 2147483647, %v556_v35  ;;  %vm563_vm2 = vweird.f32 %v556_v35 }
 0x17e   :  { %v546_v21 = vpop.f32.mrf.mxu3 }
 0x17f   :  { %v570_v46 = vor.u32 1.1754944e-38, %v569_v44  ;;  %vm568_vm4 = vcmp.eq.f32.partialorder %v567_v62, 8.507059e+37  ;;  %v326_v21 = vadd.f32 %v2078_v22, %v2082_v27 }
 0x180   :  { %v1644_v39 = vpop.eup %1643 }
 0x181   :  { %v557_v50 = vadd.f32 1.0, %v1644_v39 }
 0x183   :  { %v1646_v52 = vpop.eup %1645  ;;  %1647 = vrcp.f32 %v557_v50  ;;  %v584_v17 = vand.u32 2147483648, %v557_v50  ;;  %vm578_vm6 = vweird.f32 %v557_v50 }
 0x184   :  { %v559_v58 = vmul.f32 %v1646_v52, %v556_v35  ;;  %vm564_vm1 = vweird.f32 %v1646_v52  ;;  %v582_v35 = vand.u32 2147483647, %v557_v50 }
 0x185   :  { %vm565_vm3 = vmor %vm563_vm2, %vm564_vm1  ;;  %v585_v44 = vor.u32 1.1754944e-38, %v584_v17 }
 0x186   :  { %v560_v25 = vsub.f32 1.0, %v559_v58  ;;  %vm583_vm8 = vcmp.eq.f32.partialorder %v582_v35, 8.507059e+37 }
 0x188   :  { %v561_v60 = vmul.f32 %v1646_v52, %v560_v25 }
 0x189   :  { %v1648_v0 = vpop.eup %1647 }
 0x18a   :  { %v574_v4 = vmul.f32 %v1648_v0, %v557_v50  ;;  %v562_v9 = vadd.f32 %v1646_v52, %v561_v60  ;;  %vm579_vm5 = vweird.f32 %v1648_v0 }
 0x18b   :  { %vm580_vm7 = vmor %vm578_vm6, %vm579_vm5 }
 0x18c   :  { %v575_v23 = vsub.f32 1.0, %v574_v4  ;;  %v566_v31 = vsel %vm565_vm3, %v1646_v52, %v562_v9 }
 0x18d   :  { %v571_v18 = vsel %vm568_vm4, %v570_v46, %v566_v31 }
 0x18e   :  { %v589_v58 = vmul.f32 %v588_v12, %v571_v18  ;;  %v576_v39 = vmul.f32 %v1648_v0, %v575_v23 }
 0x190   :  { %v590_v25 = vadd.f32 %v589_v58, %v326_v21  ;;  %v577_v29 = vadd.f32 %v1648_v0, %v576_v39 }
 0x192   :  { %1649 = vtanh.f32 %v590_v25  ;;  %v581_v15 = vsel %vm580_vm7, %v1648_v0, %v577_v29 }
 0x193   :  { %v586_v62 = vsel %vm583_vm8, %v585_v44, %v581_v15 }
 0x198   :  { %v1650_v60 = vpop.eup %1649 }
 0x199   :  { %v592_v52 = vsub.f32 0.0, %v1650_v60 }
 0x19b   :  { %v593_v4 = vmul.f32 %v592_v52, %v586_v62 }
 0x19d   :  { %v2139_v9 = vadd.f32 %v1650_v60, %v593_v4 }
 0x19f   :  { %v595_v22 = vpack.c.bf16 %v2139_v9, %v2139_v9 }
 0x1a1   :  { %604 = vmatmul.bf16.vlgmr.msrb.gmra.mxu0 %v595_v22  ;;  %617 = vmatmul.bf16.vlgmr.msra.gmra.mxu1 %v595_v22 }
 0x1a2   :  { %630 = vmatmul.bf16.vlgmr.msra.gmra.mxu2 %v595_v22  ;;  %796 = vmatpush.bf16.msrb.mxu0 %v1937_v49 }
 0x1a3   :  { %857 = vmatpush.bf16.msra.mxu1 %v1914_v32  ;;  %870 = vmatpush.bf16.msra.mxu2 %v1918_v36 }
 0x1a6   :  { %797 = vmatpush.bf16.msrb.mxu0 %v1949_v1 }
 0x1a7   :  { %858 = vmatpush.bf16.msra.mxu1 %v1920_v38  ;;  %871 = vmatpush.bf16.msra.mxu2 %v1925_v41 }
 0x1aa   :  { %798 = vmatpush.bf16.msrb.mxu0 %v1962_v10 }
 0x1ab   :  { %859 = vmatpush.bf16.msra.mxu1 %v1928_v45  ;;  %872 = vmatpush.bf16.msra.mxu2 %v1939_v53 }
 0x1ae   :  { %799 = vmatpush.bf16.msrb.mxu0 %v1974_v26 }
 0x1af   :  { %860 = vmatpush.bf16.msra.mxu1 %v1942_v55  ;;  %873 = vmatpush.bf16.msra.mxu2 %v1953_v3 }
 0x1b2   :  { %800 = vmatpush.bf16.msrb.mxu0 %v1985_v40 }
 0x1b3   :  { %861 = vmatpush.bf16.msra.mxu1 %v1958_v7  ;;  %874 = vmatpush.bf16.msra.mxu2 %v1964_v14 }
 0x1b6   :  { %801 = vmatpush.bf16.msrb.mxu0 %v1997_v56 }
 0x1b7   :  { %862 = vmatpush.bf16.msra.mxu1 %v1967_v16  ;;  %875 = vmatpush.bf16.msra.mxu2 %v1978_v28 }
 0x1ba   :  { %802 = vmatpush.bf16.msrb.mxu0 %v2014_v5 }
 0x1bb   :  { %863 = vmatpush.bf16.msra.mxu1 %v1983_v34  ;;  %876 = vmatpush.bf16.msra.mxu2 %v1987_v42 }
 0x1be   :  { %803 = vmatpush.bf16.msrb.mxu0 %v2019_v8 }
 0x1bf   :  { %864 = vmatpush.bf16.msra.mxu1 %v1990_v48  ;;  %877 = vmatpush.bf16.msra.mxu2 %v1995_v54 }
 0x21e   :  { %v605_v27 = vpop.f32.mrf.mxu0  ;;  %v618_v17 = vpop.f32.mrf.mxu1 }
 0x21f   :  { %v635_v29 = vadd.f32 %v605_v27, %v2080_v24  ;;  %v636_v50 = vadd.f32 %v618_v17, %v2084_v30 }
 0x221   :  { %v1525_v0 = vmul.f32 -1.442695, %v635_v29  ;;  %v1526_v12 = vmul.f32 -1.442695, %v636_v50 }
 0x223   :  { %1651 = vpow2.f32 %v1525_v0 }
 0x224   :  { %1653 = vpow2.f32 %v1526_v12 }
 0x225   :  { %v631_v46 = vpop.f32.mrf.mxu2 }
 0x226   :  { %v607_v23 = vpop.f32.mrf.mxu0  ;;  %v620_v31 = vpop.f32.mrf.mxu1  ;;  %v675_v29 = vadd.f32 %v2134_v20, %v631_v46 }
 0x229   :  { %v1652_v18 = vpop.eup %1651 }
 0x22a   :  { %v1654_v21 = vpop.eup %1653  ;;  %v643_v58 = vadd.f32 1.0, %v1652_v18 }
 0x22b   :  { %v644_v39 = vadd.f32 1.0, %v1654_v21 }
 0x22c   :  { %1655 = vrcp.f32 %v643_v58  ;;  %v656_v30 = vand.u32 2147483648, %v643_v58  ;;  %v654_v62 = vand.u32 2147483647, %v643_v58  ;;  %vm650_vm10 = vweird.f32 %v643_v58 }
 0x22d   :  { %1657 = vrcp.f32 %v644_v39  ;;  %v633_v25 = vpop.f32.mrf.mxu2  ;;  %v671_v18 = vand.u32 2147483648, %v644_v39  ;;  %vm665_vm14 = vweird.f32 %v644_v39  ;;  %v669_v21 = vand.u32 2147483647, %v644_v39 }
 0x22e   :  { %v657_v27 = vor.u32 1.1754944e-38, %v656_v30  ;;  %vm655_vm12 = vcmp.eq.f32.partialorder %v654_v62, 8.507059e+37 }
 0x22f   :  { %vm670_vm1 = vcmp.eq.f32.partialorder %v669_v21, 8.507059e+37 }
 0x232   :  { %v1656_v35 = vpop.eup %1655 }
 0x233   :  { %v1658_v15 = vpop.eup %1657  ;;  %v646_v60 = vmul.f32 %v1656_v35, %v643_v58  ;;  %vm651_vm9 = vweird.f32 %v1656_v35 }
 0x234   :  { %v661_v44 = vmul.f32 %v1658_v15, %v644_v39  ;;  %vm652_vm11 = vmor %vm650_vm10, %vm651_vm9  ;;  %vm666_vm13 = vweird.f32 %v1658_v15 }
 0x235   :  { %v647_v24 = vsub.f32 1.0, %v646_v60  ;;  %vm667_vm15 = vmor %vm665_vm14, %vm666_vm13  ;;  %v672_v60 = vor.u32 1.1754944e-38, %v671_v18 }
 0x236   :  { %v662_v22 = vsub.f32 1.0, %v661_v44 }
 0x237   :  { %v648_v52 = vmul.f32 %v1656_v35, %v647_v24 }
 0x238   :  { %v663_v12 = vmul.f32 %v1658_v15, %v662_v22 }
 0x239   :  { %v649_v4 = vadd.f32 %v1656_v35, %v648_v52 }
 0x23a   :  { %v664_v31 = vadd.f32 %v1658_v15, %v663_v12 }
 0x23b   :  { %v653_v17 = vsel %vm652_vm11, %v1656_v35, %v649_v4 }
 0x23c   :  { %v658_v50 = vsel %vm655_vm12, %v657_v27, %v653_v17  ;;  %v668_v58 = vsel %vm667_vm15, %v1658_v15, %v664_v31 }
 0x23d   :  { %v676_v0 = vmul.f32 %v675_v29, %v658_v50  ;;  %v673_v24 = vsel %vm670_vm1, %v672_v60, %v668_v58 }
 0x23f   :  { %v677_v23 = vadd.f32 %v676_v0, %v2087_v33 }
 0x241   :  { %1659 = vtanh.f32 %v677_v23 }
 0x247   :  { %v1660_v25 = vpop.eup %1659 }
 0x248   :  { %v679_v35 = vsub.f32 %v2139_v9, %v1660_v25 }
 0x24a   :  { %v680_v46 = vmul.f32 %v679_v35, %v673_v24 }
 0x24c   :  { %v2172_v44 = vadd.f32 %v1660_v25, %v680_v46 }
 0x24e   :  { %v682_v33 = vpack.c.bf16 %v2172_v44, %v2172_v44 }
 0x250   :  { %691 = vmatmul.bf16.vlgmr.msra.gmra.mxu3 %v682_v33  ;;  %704 = vmatmul.bf16.vlgmr.msra.gmra.mxu0 %v682_v33 }
 0x251   :  { %717 = vmatmul.bf16.vlgmr.msrb.gmra.mxu1 %v682_v33  ;;  %883 = vmatpush.bf16.msra.mxu3 %v1937_v49 }
 0x252   :  { %944 = vmatpush.bf16.msra.mxu0 %v1914_v32  ;;  %957 = vmatpush.bf16.msrb.mxu1 %v1918_v36 }
 0x255   :  { %884 = vmatpush.bf16.msra.mxu3 %v1949_v1 }
 0x256   :  { %945 = vmatpush.bf16.msra.mxu0 %v1920_v38  ;;  %958 = vmatpush.bf16.msrb.mxu1 %v1925_v41 }
 0x259   :  { %885 = vmatpush.bf16.msra.mxu3 %v1962_v10 }
 0x25a   :  { %946 = vmatpush.bf16.msra.mxu0 %v1928_v45  ;;  %959 = vmatpush.bf16.msrb.mxu1 %v1939_v53 }
 0x25d   :  { %886 = vmatpush.bf16.msra.mxu3 %v1974_v26 }
 0x25e   :  { %947 = vmatpush.bf16.msra.mxu0 %v1942_v55  ;;  %960 = vmatpush.bf16.msrb.mxu1 %v1953_v3 }
 0x261   :  { %887 = vmatpush.bf16.msra.mxu3 %v1985_v40 }
 0x262   :  { %948 = vmatpush.bf16.msra.mxu0 %v1958_v7  ;;  %961 = vmatpush.bf16.msrb.mxu1 %v1964_v14 }
 0x265   :  { %888 = vmatpush.bf16.msra.mxu3 %v1997_v56 }
 0x266   :  { %949 = vmatpush.bf16.msra.mxu0 %v1967_v16  ;;  %962 = vmatpush.bf16.msrb.mxu1 %v1978_v28 }
 0x269   :  { %889 = vmatpush.bf16.msra.mxu3 %v2014_v5 }
 0x26a   :  { %950 = vmatpush.bf16.msra.mxu0 %v1983_v34  ;;  %963 = vmatpush.bf16.msrb.mxu1 %v1987_v42 }
 0x26d   :  { %890 = vmatpush.bf16.msra.mxu3 %v2019_v8 }
 0x26e   :  { %951 = vmatpush.bf16.msra.mxu0 %v1990_v48  ;;  %964 = vmatpush.bf16.msrb.mxu1 %v1995_v54 }
 0x2cd   :  { %v705_v9 = vpop.f32.mrf.mxu0 }
 0x2ce   :  { %v723_v39 = vadd.f32 %v705_v9, %v2091_v43  ;;  %v718_v15 = vpop.f32.mrf.mxu1 }
 0x2cf   :  { %v762_v46 = vadd.f32 %v2134_v20, %v718_v15 }
 0x2d0   :  { %v1528_v30 = vmul.f32 -1.442695, %v723_v39 }
 0x2d2   :  { %1661 = vpow2.f32 %v1528_v30 }
 0x2d3   :  { %v692_v52 = vpop.f32.mrf.mxu3 }
 0x2d4   :  { %v722_v62 = vadd.f32 %v692_v52, %v2089_v37 }
 0x2d5   :  { %v707_v4 = vpop.f32.mrf.mxu0 }
 0x2d6   :  { %v1527_v22 = vmul.f32 -1.442695, %v722_v62  ;;  %v720_v27 = vpop.f32.mrf.mxu1 }
 0x2d8   :  { %1663 = vpow2.f32 %v1527_v22  ;;  %v1662_v17 = vpop.eup %1661 }
 0x2d9   :  { %v731_v0 = vadd.f32 1.0, %v1662_v17 }
 0x2db   :  { %v694_v29 = vpop.f32.mrf.mxu3  ;;  %v758_v4 = vand.u32 2147483648, %v731_v0  ;;  %vm752_vm7 = vweird.f32 %v731_v0  ;;  %v756_v22 = vand.u32 2147483647, %v731_v0 }
 0x2dd   :  { %v759_v29 = vor.u32 1.1754944e-38, %v758_v4  ;;  %vm757_vm9 = vcmp.eq.f32.partialorder %v756_v22, 8.507059e+37 }
 0x2de   :  { %v1664_v50 = vpop.eup %1663 }
 0x2df   :  { %v730_v12 = vadd.f32 1.0, %v1664_v50 }
 0x2e1   :  { %1665 = vrcp.f32 %v730_v12  ;;  %v743_v58 = vand.u32 2147483648, %v730_v12  ;;  %v741_v37 = vand.u32 2147483647, %v730_v12  ;;  %vm737_vm3 = vweird.f32 %v730_v12 }
 0x2e2   :  { %1667 = vrcp.f32 %v731_v0 }
 0x2e3   :  { %v744_v24 = vor.u32 1.1754944e-38, %v743_v58  ;;  %vm742_vm5 = vcmp.eq.f32.partialorder %v741_v37, 8.507059e+37 }
 0x2e7   :  { %v1666_v23 = vpop.eup %1665 }
 0x2e8   :  { %v1668_v31 = vpop.eup %1667  ;;  %v733_v43 = vmul.f32 %v1666_v23, %v730_v12  ;;  %vm738_vm2 = vweird.f32 %v1666_v23 }
 0x2e9   :  { %v748_v21 = vmul.f32 %v1668_v31, %v731_v0  ;;  %vm739_vm4 = vmor %vm737_vm3, %vm738_vm2  ;;  %vm753_vm6 = vweird.f32 %v1668_v31 }
 0x2ea   :  { %v734_v18 = vsub.f32 1.0, %v733_v43  ;;  %vm754_vm8 = vmor %vm752_vm7, %vm753_vm6 }
 0x2eb   :  { %v749_v35 = vsub.f32 1.0, %v748_v21 }
 0x2ec   :  { %v735_v25 = vmul.f32 %v1666_v23, %v734_v18 }
 0x2ed   :  { %v750_v30 = vmul.f32 %v1668_v31, %v749_v35 }
 0x2ee   :  { %v736_v60 = vadd.f32 %v1666_v23, %v735_v25 }
 0x2ef   :  { %v751_v62 = vadd.f32 %v1668_v31, %v750_v30 }
 0x2f0   :  { %v740_v33 = vsel %vm739_vm4, %v1666_v23, %v736_v60 }
 0x2f1   :  { %v745_v9 = vsel %vm742_vm5, %v744_v24, %v740_v33  ;;  %v755_v27 = vsel %vm754_vm8, %v1668_v31, %v751_v62 }
 0x2f2   :  { %v763_v39 = vmul.f32 %v762_v46, %v745_v9  ;;  %v760_v50 = vsel %vm757_vm9, %v759_v29, %v755_v27 }
 0x2f4   :  { %v764_v52 = vadd.f32 %v763_v39, %v2094_v47 }
 0x2f6   :  { %1669 = vtanh.f32 %v764_v52 }
 0x2fc   :  { %v1670_v17 = vpop.eup %1669 }
 0x2fd   :  { %v766_v15 = vsub.f32 %v2172_v44, %v1670_v17 }
 0x2ff   :  { %v767_v12 = vmul.f32 %v766_v15, %v760_v50 }
 0x301   :  { %v2205_v23 = vadd.f32 %v1670_v17, %v767_v12 }
 0x303   :  { %v769_v47 = vpack.c.bf16 %v2205_v23, %v2205_v23 }
 0x305   :  { %778 = vmatmul.bf16.vlgmr.msrb.gmra.mxu2 %v769_v47  ;;  %791 = vmatmul.bf16.vlgmr.msrb.gmra.mxu3 %v769_v47 }
 0x306   :  { %804 = vmatmul.bf16.vlgmr.msrb.gmra.mxu0 %v769_v47  ;;  %970 = vmatpush.bf16.msrb.mxu2 %v1937_v49 }
 0x307   :  { %1031 = vmatpush.bf16.msrb.mxu3 %v1914_v32  ;;  %1044 = vmatpush.bf16.msrb.mxu0 %v1918_v36 }
 0x30a   :  { %971 = vmatpush.bf16.msrb.mxu2 %v1949_v1 }
 0x30b   :  { %1032 = vmatpush.bf16.msrb.mxu3 %v1920_v38  ;;  %1045 = vmatpush.bf16.msrb.mxu0 %v1925_v41 }
 0x30e   :  { %972 = vmatpush.bf16.msrb.mxu2 %v1962_v10 }
 0x30f   :  { %1033 = vmatpush.bf16.msrb.mxu3 %v1928_v45  ;;  %1046 = vmatpush.bf16.msrb.mxu0 %v1939_v53 }
 0x312   :  { %973 = vmatpush.bf16.msrb.mxu2 %v1974_v26 }
 0x313   :  { %1034 = vmatpush.bf16.msrb.mxu3 %v1942_v55  ;;  %1047 = vmatpush.bf16.msrb.mxu0 %v1953_v3 }
 0x316   :  { %974 = vmatpush.bf16.msrb.mxu2 %v1985_v40 }
 0x317   :  { %1035 = vmatpush.bf16.msrb.mxu3 %v1958_v7  ;;  %1048 = vmatpush.bf16.msrb.mxu0 %v1964_v14 }
 0x31a   :  { %975 = vmatpush.bf16.msrb.mxu2 %v1997_v56 }
 0x31b   :  { %1036 = vmatpush.bf16.msrb.mxu3 %v1967_v16  ;;  %1049 = vmatpush.bf16.msrb.mxu0 %v1978_v28 }
 0x31e   :  { %976 = vmatpush.bf16.msrb.mxu2 %v2014_v5 }
 0x31f   :  { %1037 = vmatpush.bf16.msrb.mxu3 %v1983_v34  ;;  %1050 = vmatpush.bf16.msrb.mxu0 %v1987_v42 }
 0x322   :  { %977 = vmatpush.bf16.msrb.mxu2 %v2019_v8 }
 0x323   :  { %1038 = vmatpush.bf16.msrb.mxu3 %v1990_v48  ;;  %1051 = vmatpush.bf16.msrb.mxu0 %v1995_v54 }
 0x383   :  { %v805_v44 = vpop.f32.mrf.mxu0 }
 0x384   :  { %v849_v29 = vadd.f32 %v2134_v20, %v805_v44 }
 0x388   :  { %v779_v0 = vpop.f32.mrf.mxu2  ;;  %v792_v31 = vpop.f32.mrf.mxu3 }
 0x389   :  { %v809_v43 = vadd.f32 %v779_v0, %v2096_v51  ;;  %v810_v18 = vadd.f32 %v792_v31, %v2098_v57 }
 0x38b   :  { %v1529_v21 = vmul.f32 -1.442695, %v809_v43  ;;  %v1530_v58 = vmul.f32 -1.442695, %v810_v18  ;;  %v807_v25 = vpop.f32.mrf.mxu0 }
 0x38d   :  { %1671 = vpow2.f32 %v1529_v21 }
 0x38e   :  { %1673 = vpow2.f32 %v1530_v58 }
 0x390   :  { %v781_v37 = vpop.f32.mrf.mxu2  ;;  %v794_v60 = vpop.f32.mrf.mxu3 }
 0x393   :  { %v1672_v35 = vpop.eup %1671 }
 0x394   :  { %v1674_v24 = vpop.eup %1673  ;;  %v817_v46 = vadd.f32 1.0, %v1672_v35 }
 0x395   :  { %v818_v33 = vadd.f32 1.0, %v1674_v24 }
 0x396   :  { %1675 = vrcp.f32 %v817_v46  ;;  %v830_v51 = vand.u32 2147483648, %v817_v46  ;;  %v828_v4 = vand.u32 2147483647, %v817_v46  ;;  %vm824_vm11 = vweird.f32 %v817_v46 }
 0x397   :  { %1677 = vrcp.f32 %v818_v33  ;;  %v845_v43 = vand.u32 2147483648, %v818_v33  ;;  %vm839_vm15 = vweird.f32 %v818_v33  ;;  %v843_v18 = vand.u32 2147483647, %v818_v33 }
 0x398   :  { %v831_v27 = vor.u32 1.1754944e-38, %v830_v51  ;;  %vm829_vm13 = vcmp.eq.f32.partialorder %v828_v4, 8.507059e+37 }
 0x399   :  { %v846_v25 = vor.u32 1.1754944e-38, %v845_v43  ;;  %vm844_vm2 = vcmp.eq.f32.partialorder %v843_v18, 8.507059e+37 }
 0x39c   :  { %v1676_v9 = vpop.eup %1675 }
 0x39d   :  { %v1678_v39 = vpop.eup %1677  ;;  %v820_v30 = vmul.f32 %v1676_v9, %v817_v46  ;;  %vm825_vm10 = vweird.f32 %v1676_v9 }
 0x39e   :  { %v835_v62 = vmul.f32 %v1678_v39, %v818_v33  ;;  %vm826_vm12 = vmor %vm824_vm11, %vm825_vm10  ;;  %vm840_vm14 = vweird.f32 %v1678_v39 }
 0x39f   :  { %v821_v52 = vsub.f32 1.0, %v820_v30  ;;  %vm841_vm1 = vmor %vm839_vm15, %vm840_vm14 }
 0x3a0   :  { %v836_v17 = vsub.f32 1.0, %v835_v62 }
 0x3a1   :  { %v822_v57 = vmul.f32 %v1676_v9, %v821_v52 }
 0x3a2   :  { %v837_v47 = vmul.f32 %v1678_v39, %v836_v17 }
 0x3a3   :  { %v823_v22 = vadd.f32 %v1676_v9, %v822_v57 }
 0x3a4   :  { %v838_v31 = vadd.f32 %v1678_v39, %v837_v47 }
 0x3a5   :  { %v827_v15 = vsel %vm826_vm12, %v1676_v9, %v823_v22 }
 0x3a6   :  { %v832_v50 = vsel %vm829_vm13, %v831_v27, %v827_v15  ;;  %v842_v21 = vsel %vm841_vm1, %v1678_v39, %v838_v31 }
 0x3a7   :  { %v850_v12 = vmul.f32 %v849_v29, %v832_v50  ;;  %v847_v37 = vsel %vm844_vm2, %v846_v25, %v842_v21 }
 0x3a9   :  { %v851_v0 = vadd.f32 %v850_v12, %v2101_v59 }
 0x3ab   :  { %1679 = vtanh.f32 %v851_v0 }
 0x3b1   :  { %v1680_v58 = vpop.eup %1679 }
 0x3b2   :  { %v853_v44 = vsub.f32 %v2205_v23, %v1680_v58 }
 0x3b4   :  { %v854_v60 = vmul.f32 %v853_v44, %v847_v37 }
 0x3b6   :  { %v2238_v35 = vadd.f32 %v1680_v58, %v854_v60 }
 0x3b8   :  { %v856_v59 = vpack.c.bf16 %v2238_v35, %v2238_v35 }
 0x3ba   :  { %865 = vmatmul.bf16.vlgmr.msra.gmra.mxu1 %v856_v59  ;;  %878 = vmatmul.bf16.vlgmr.msra.gmra.mxu2 %v856_v59 }
 0x3bb   :  { %891 = vmatmul.bf16.vlgmr.msra.gmra.mxu3 %v856_v59  ;;  %1057 = vmatpush.bf16.msra.mxu1 %v1937_v49 }
 0x3bc   :  { %1118 = vmatpush.bf16.msra.mxu2 %v1914_v32  ;;  %1131 = vmatpush.bf16.msra.mxu3 %v1918_v36 }
 0x3bf   :  { %1058 = vmatpush.bf16.msra.mxu1 %v1949_v1 }
 0x3c0   :  { %1119 = vmatpush.bf16.msra.mxu2 %v1920_v38  ;;  %1132 = vmatpush.bf16.msra.mxu3 %v1925_v41 }
 0x3c3   :  { %1059 = vmatpush.bf16.msra.mxu1 %v1962_v10 }
 0x3c4   :  { %1120 = vmatpush.bf16.msra.mxu2 %v1928_v45  ;;  %1133 = vmatpush.bf16.msra.mxu3 %v1939_v53 }
 0x3c7   :  { %1060 = vmatpush.bf16.msra.mxu1 %v1974_v26 }
 0x3c8   :  { %1121 = vmatpush.bf16.msra.mxu2 %v1942_v55  ;;  %1134 = vmatpush.bf16.msra.mxu3 %v1953_v3 }
 0x3cb   :  { %1061 = vmatpush.bf16.msra.mxu1 %v1985_v40 }
 0x3cc   :  { %1122 = vmatpush.bf16.msra.mxu2 %v1958_v7  ;;  %1135 = vmatpush.bf16.msra.mxu3 %v1964_v14 }
 0x3cf   :  { %1062 = vmatpush.bf16.msra.mxu1 %v1997_v56 }
 0x3d0   :  { %1123 = vmatpush.bf16.msra.mxu2 %v1967_v16  ;;  %1136 = vmatpush.bf16.msra.mxu3 %v1978_v28 }
 0x3d3   :  { %1063 = vmatpush.bf16.msra.mxu1 %v2014_v5 }
 0x3d4   :  { %1124 = vmatpush.bf16.msra.mxu2 %v1983_v34  ;;  %1137 = vmatpush.bf16.msra.mxu3 %v1987_v42 }
 0x3d7   :  { %1064 = vmatpush.bf16.msra.mxu1 %v2019_v8 }
 0x3d8   :  { %1125 = vmatpush.bf16.msra.mxu2 %v1990_v48  ;;  %1138 = vmatpush.bf16.msra.mxu3 %v1995_v54 }
 0x437   :  { %v866_v32 = vpop.f32.mrf.mxu1 }
 0x438   :  { %v896_v36 = vadd.f32 %v866_v32, %v2103_v61 }
 0x43a   :  { %v1531_v38 = vmul.f32 -1.442695, %v896_v36 }
 0x43c   :  { %1681 = vpow2.f32 %v1531_v38 }
 0x43d   :  { %v879_v41 = vpop.f32.mrf.mxu2 }
 0x43e   :  { %v897_v45 = vadd.f32 %v879_v41, %v2105_v63  ;;  %v892_v53 = vpop.f32.mrf.mxu3 }
 0x43f   :  { %v868_v55 = vpop.f32.mrf.mxu1  ;;  %v936_v51 = vadd.f32 %v2134_v20, %v892_v53 }
 0x440   :  { %v1532_v3 = vmul.f32 -1.442695, %v897_v45 }
 0x442   :  { %v1682_v7 = vpop.eup %1681  ;;  %1683 = vpow2.f32 %v1532_v3 }
 0x443   :  { %v904_v14 = vadd.f32 1.0, %v1682_v7 }
 0x445   :  { %1685 = vrcp.f32 %v904_v14  ;;  %v881_v16 = vpop.f32.mrf.mxu2  ;;  %v917_v23 = vand.u32 2147483648, %v904_v14  ;;  %v915_v46 = vand.u32 2147483647, %v904_v14  ;;  %vm911_vm4 = vweird.f32 %v904_v14 }
 0x446   :  { %v894_v28 = vpop.f32.mrf.mxu3 }
 0x447   :  { %v918_v39 = vor.u32 1.1754944e-38, %v917_v23  ;;  %vm916_vm6 = vcmp.eq.f32.partialorder %v915_v46, 8.507059e+37 }
 0x448   :  { %v1684_v34 = vpop.eup %1683 }
 0x449   :  { %v905_v42 = vadd.f32 1.0, %v1684_v34 }
 0x44b   :  { %v1686_v48 = vpop.eup %1685  ;;  %1687 = vrcp.f32 %v905_v42  ;;  %v932_v17 = vand.u32 2147483648, %v905_v42  ;;  %vm926_vm8 = vweird.f32 %v905_v42  ;;  %v930_v29 = vand.u32 2147483647, %v905_v42 }
 0x44c   :  { %v907_v54 = vmul.f32 %v1686_v48, %v904_v14  ;;  %vm912_vm3 = vweird.f32 %v1686_v48 }
 0x44d   :  { %vm913_vm5 = vmor %vm911_vm4, %vm912_vm3  ;;  %v933_v12 = vor.u32 1.1754944e-38, %v932_v17  ;;  %vm931_vm10 = vcmp.eq.f32.partialorder %v930_v29, 8.507059e+37 }
 0x44e   :  { %v908_v61 = vsub.f32 1.0, %v907_v54 }
 0x450   :  { %v909_v24 = vmul.f32 %v1686_v48, %v908_v61 }
 0x451   :  { %v1688_v63 = vpop.eup %1687 }
 0x452   :  { %v922_v33 = vmul.f32 %v1688_v63, %v905_v42  ;;  %v910_v9 = vadd.f32 %v1686_v48, %v909_v24  ;;  %vm927_vm7 = vweird.f32 %v1688_v63 }
 0x453   :  { %vm928_vm9 = vmor %vm926_vm8, %vm927_vm7 }
 0x454   :  { %v923_v30 = vsub.f32 1.0, %v922_v33  ;;  %v914_v52 = vsel %vm913_vm5, %v1686_v48, %v910_v9 }
 0x455   :  { %v919_v62 = vsel %vm916_vm6, %v918_v39, %v914_v52 }
 0x456   :  { %v937_v57 = vmul.f32 %v936_v51, %v919_v62  ;;  %v924_v4 = vmul.f32 %v1688_v63, %v923_v30  ;;  %v2360_v62 = vld [vmem:[#allocation8_spill] sm:$0xff] }
 0x458   :  { %v938_v22 = vadd.f32 %v937_v57, %v2108_v2  ;;  %v925_v27 = vadd.f32 %v1688_v63, %v924_v4 }
 0x45a   :  { %1689 = vtanh.f32 %v938_v22  ;;  %v929_v15 = vsel %vm928_vm9, %v1688_v63, %v925_v27 }
 0x45b   :  { %v934_v0 = vsel %vm931_vm10, %v933_v12, %v929_v15 }
 0x460   :  { %v1690_v50 = vpop.eup %1689 }
 0x461   :  { %v940_v47 = vsub.f32 %v2238_v35, %v1690_v50 }
 0x463   :  { %v941_v31 = vmul.f32 %v940_v47, %v934_v0 }
 0x465   :  { %v2271_v43 = vadd.f32 %v1690_v50, %v941_v31 }
 0x467   :  { %v943_v2 = vpack.c.bf16 %v2271_v43, %v2271_v43 }
 0x469   :  { %952 = vmatmul.bf16.vlgmr.msra.gmra.mxu0 %v943_v2  ;;  %965 = vmatmul.bf16.vlgmr.msrb.gmra.mxu1 %v943_v2 }
 0x46a   :  { %978 = vmatmul.bf16.vlgmr.msrb.gmra.mxu2 %v943_v2  ;;  %1144 = vmatpush.bf16.msra.mxu0 %v1937_v49 }
 0x46e   :  { %1145 = vmatpush.bf16.msra.mxu0 %v1949_v1 }
 0x472   :  { %1146 = vmatpush.bf16.msra.mxu0 %v1962_v10 }
 0x476   :  { %1147 = vmatpush.bf16.msra.mxu0 %v1974_v26 }
 0x47a   :  { %1148 = vmatpush.bf16.msra.mxu0 %v1985_v40 }
 0x47e   :  { %1149 = vmatpush.bf16.msra.mxu0 %v1997_v56 }
 0x482   :  { %1150 = vmatpush.bf16.msra.mxu0 %v2014_v5 }
 0x486   :  { %1151 = vmatpush.bf16.msra.mxu0 %v2019_v8 }
 0x4e6   :  { %v953_v18 = vpop.f32.mrf.mxu0  ;;  %v966_v21 = vpop.f32.mrf.mxu1 }
 0x4e7   :  { %v983_v58 = vadd.f32 %v953_v18, %v2110_v6  ;;  %v984_v49 = vadd.f32 %v966_v21, %v2112_v11 }
 0x4e9   :  { %v1533_v25 = vmul.f32 -1.442695, %v983_v58  ;;  %v1534_v1 = vmul.f32 -1.442695, %v984_v49 }
 0x4eb   :  { %1691 = vpow2.f32 %v1533_v25 }
 0x4ec   :  { %1693 = vpow2.f32 %v1534_v1 }
 0x4ed   :  { %v979_v10 = vpop.f32.mrf.mxu2 }
 0x4ee   :  { %v955_v26 = vpop.f32.mrf.mxu0  ;;  %v968_v44 = vpop.f32.mrf.mxu1  ;;  %v1023_v3 = vadd.f32 %v2134_v20, %v979_v10 }
 0x4f1   :  { %v1692_v40 = vpop.eup %1691 }
 0x4f2   :  { %v1694_v37 = vpop.eup %1693  ;;  %v991_v56 = vadd.f32 1.0, %v1692_v40 }
 0x4f3   :  { %v992_v60 = vadd.f32 1.0, %v1694_v37  ;;  %v2361_v37 = vld [vmem:[#allocation9_spill] sm:$0xff] }
 0x4f4   :  { %1695 = vrcp.f32 %v991_v56  ;;  %v1004_v11 = vand.u32 2147483648, %v991_v56  ;;  %v1002_v38 = vand.u32 2147483647, %v991_v56  ;;  %vm998_vm12 = vweird.f32 %v991_v56 }
 0x4f5   :  { %1697 = vrcp.f32 %v992_v60  ;;  %v981_v5 = vpop.f32.mrf.mxu2  ;;  %v1019_v42 = vand.u32 2147483648, %v992_v60  ;;  %vm1013_vm1 = vweird.f32 %v992_v60  ;;  %v1017_v48 = vand.u32 2147483647, %v992_v60 }
 0x4f6   :  { %v1005_v53 = vor.u32 1.1754944e-38, %v1004_v11  ;;  %vm1003_vm14 = vcmp.eq.f32.partialorder %v1002_v38, 8.507059e+37 }
 0x4f7   :  { %v1020_v23 = vor.u32 1.1754944e-38, %v1019_v42  ;;  %vm1018_vm3 = vcmp.eq.f32.partialorder %v1017_v48, 8.507059e+37  ;;  %v2363_v42 = vld [vmem:[#allocation11_spill] sm:$0xff] }
 0x4fa   :  { %v1696_v8 = vpop.eup %1695 }
 0x4fb   :  { %v1698_v35 = vpop.eup %1697  ;;  %v994_v59 = vmul.f32 %v1696_v8, %v991_v56  ;;  %vm999_vm11 = vweird.f32 %v1696_v8 }
 0x4fc   :  { %v1009_v32 = vmul.f32 %v1698_v35, %v992_v60  ;;  %vm1000_vm13 = vmor %vm998_vm12, %vm999_vm11  ;;  %vm1014_vm15 = vweird.f32 %v1698_v35 }
 0x4fd   :  { %v995_v6 = vsub.f32 1.0, %v994_v59  ;;  %vm1015_vm2 = vmor %vm1013_vm1, %vm1014_vm15 }
 0x4fe   :  { %v1010_v45 = vsub.f32 1.0, %v1009_v32 }
 0x4ff   :  { %v996_v36 = vmul.f32 %v1696_v8, %v995_v6 }
 0x500   :  { %v1011_v16 = vmul.f32 %v1698_v35, %v1010_v45  ;;  %v1628_v45 = vld [vmem:[%s2350_s7 + $0x30] sm:$0xff] }
 0x501   :  { %v997_v41 = vadd.f32 %v1696_v8, %v996_v36 }
 0x502   :  { %v1012_v34 = vadd.f32 %v1698_v35, %v1011_v16  ;;  %v1625_v16 = vld [vmem:[%s2350_s7 + $0x18] sm:$0xff] }
 0x503   :  { %v1001_v55 = vsel %vm1000_vm13, %v1696_v8, %v997_v41  ;;  %v1629_v41 = vld [vmem:[%s2350_s7 + $0x38] sm:$0xff] }
 0x504   :  { %v1006_v7 = vsel %vm1003_vm14, %v1005_v53, %v1001_v55  ;;  %v1016_v54 = vsel %vm1015_vm2, %v1698_v35, %v1012_v34  ;;  %1273 = vmatpush.bf16.msrb.mxu1 %v1629_v41  ;;  %v1627_v53 = vld [vmem:[%s2350_s7 + $0x28] sm:$0xff] }
 0x505   :  { %v1024_v14 = vmul.f32 %v1023_v3, %v1006_v7  ;;  %v1021_v46 = vsel %vm1018_vm3, %v1020_v23, %v1016_v54  ;;  %v1626_v3 = vld [vmem:[%s2350_s7 + $0x20] sm:$0xff] }
 0x507   :  { %v1025_v28 = vadd.f32 %v1024_v14, %v2115_v13 }
 0x508   :  { %1274 = vmatpush.bf16.msrb.mxu1 %v1628_v45 }
 0x509   :  { %1699 = vtanh.f32 %v1025_v28  ;;  %v2362_v28 = vld [vmem:[#allocation10_spill] sm:$0xff] }
 0x50c   :  { %1275 = vmatpush.bf16.msrb.mxu1 %v1627_v53 }
 0x50f   :  { %v1700_v61 = vpop.eup %1699 }
 0x510   :  { %v1027_v24 = vsub.f32 %v2271_v43, %v1700_v61  ;;  %1276 = vmatpush.bf16.msrb.mxu1 %v1626_v3 }
 0x512   :  { %v1028_v63 = vmul.f32 %v1027_v24, %v1021_v46  ;;  %v1624_v24 = vld [vmem:[%s2350_s7 + $0x10] sm:$0xff] }
 0x514   :  { %v1029_v33 = vadd.f32 %v1700_v61, %v1028_v63  ;;  %1277 = vmatpush.bf16.msrb.mxu1 %v1625_v16 }
 0x516   :  { %v1030_v9 = vpack.c.bf16 %v1029_v33, %v1029_v33 }
 0x518   :  { %1039 = vmatmul.bf16.vlgmr.msrb.gmra.mxu3 %v1030_v9  ;;  %1052 = vmatmul.bf16.vlgmr.msrb.gmra.mxu0 %v1030_v9 }
 0x519   :  { %1065 = vmatmul.bf16.vlgmr.msra.gmra.mxu1 %v1030_v9 }
 0x51a   :  { %1278 = vmatpush.bf16.msrb.mxu1 %v1624_v24 }
 0x595   :  { %v1053_v13 = vpop.f32.mrf.mxu0 }
 0x596   :  { %v1071_v39 = vadd.f32 %v1053_v13, %v2119_v19  ;;  %v1066_v30 = vpop.f32.mrf.mxu1 }
 0x597   :  { %v1110_v1 = vadd.f32 %v2134_v20, %v1066_v30  ;;  %v1622_v30 = vld [vmem:[%s2350_s7] sm:$0xff] }
 0x598   :  { %v1536_v52 = vmul.f32 -1.442695, %v1071_v39 }
 0x59a   :  { %1701 = vpow2.f32 %v1536_v52 }
 0x59b   :  { %v1040_v51 = vpop.f32.mrf.mxu3 }
 0x59c   :  { %v1070_v57 = vadd.f32 %v1040_v51, %v2360_v62  ;;  %v1631_v51 = vld [vmem:[%s2352_s9 + $0x8] sm:$0xff] }
 0x59d   :  { %v1055_v4 = vpop.f32.mrf.mxu0  ;;  %1317 = vmatpush.bf16.msrb.mxu2 %v1631_v51 }
 0x59e   :  { %v1535_v22 = vmul.f32 -1.442695, %v1070_v57  ;;  %v1068_v27 = vpop.f32.mrf.mxu1  ;;  %v1630_v57 = vld [vmem:[%s2352_s9] sm:$0xff] }
 0x5a0   :  { %1703 = vpow2.f32 %v1535_v22  ;;  %v1702_v17 = vpop.eup %1701 }
 0x5a1   :  { %v1079_v50 = vadd.f32 1.0, %v1702_v17  ;;  %1318 = vmatpush.bf16.msrb.mxu2 %v1630_v57 }
 0x5a3   :  { %v1042_v29 = vpop.f32.mrf.mxu3  ;;  %v1106_v5 = vand.u32 2147483648, %v1079_v50  ;;  %vm1100_vm9 = vweird.f32 %v1079_v50  ;;  %v1104_v8 = vand.u32 2147483647, %v1079_v50 }
 0x5a5   :  { %v1107_v6 = vor.u32 1.1754944e-38, %v1106_v5  ;;  %vm1105_vm11 = vcmp.eq.f32.partialorder %v1104_v8, 8.507059e+37 }
 0x5a6   :  { %v1704_v15 = vpop.eup %1703 }
 0x5a7   :  { %v1078_v12 = vadd.f32 1.0, %v1704_v15 }
 0x5a9   :  { %1705 = vrcp.f32 %v1078_v12  ;;  %v1091_v2 = vand.u32 2147483648, %v1078_v12  ;;  %v1089_v21 = vand.u32 2147483647, %v1078_v12  ;;  %vm1085_vm5 = vweird.f32 %v1078_v12 }
 0x5aa   :  { %1707 = vrcp.f32 %v1079_v50 }
 0x5ab   :  { %v1092_v25 = vor.u32 1.1754944e-38, %v1091_v2  ;;  %vm1090_vm7 = vcmp.eq.f32.partialorder %v1089_v21, 8.507059e+37 }
 0x5af   :  { %v1706_v47 = vpop.eup %1705 }
 0x5b0   :  { %v1708_v0 = vpop.eup %1707  ;;  %v1081_v19 = vmul.f32 %v1706_v47, %v1078_v12  ;;  %vm1086_vm4 = vweird.f32 %v1706_v47 }
 0x5b1   :  { %v1096_v43 = vmul.f32 %v1708_v0, %v1079_v50  ;;  %vm1087_vm6 = vmor %vm1085_vm5, %vm1086_vm4  ;;  %vm1101_vm8 = vweird.f32 %v1708_v0  ;;  %vm1324_vm5 = vcmask 64512  }
 0x5b2   :  { %v1082_v31 = vsub.f32 1.0, %v1081_v19  ;;  %vm1102_vm10 = vmor %vm1100_vm9, %vm1101_vm8  ;;  %v1721_v19 = vld [vmem:[%s2349_s6] ss:$0 sm:$0xff] }
 0x5b3   :  { %v1097_v49 = vsub.f32 1.0, %v1096_v43 }
 0x5b4   :  { %v1083_v18 = vmul.f32 %v1706_v47, %v1082_v31 }
 0x5b5   :  { %v1098_v40 = vmul.f32 %v1708_v0, %v1097_v49 }
 0x5b6   :  { %v1084_v58 = vadd.f32 %v1706_v47, %v1083_v18 }
 0x5b7   :  { %v1099_v60 = vadd.f32 %v1708_v0, %v1098_v40 }
 0x5b8   :  { %v1088_v10 = vsel %vm1087_vm6, %v1706_v47, %v1084_v58  ;;  %v2364_v58 = vld [vmem:[#allocation12_spill] sm:$0xff] }
 0x5b9   :  { %v1093_v26 = vsel %vm1090_vm7, %v1092_v25, %v1088_v10  ;;  %v1103_v35 = vsel %vm1102_vm10, %v1708_v0, %v1099_v60 }
 0x5ba   :  { %v1111_v44 = vmul.f32 %v1110_v1, %v1093_v26  ;;  %v1108_v20 = vsel %vm1105_vm11, %v1107_v6, %v1103_v35  ;;  %v1639_v35 = vld [vmem:[%s2351_s8] ss:$0 sm:$0xff] }
 0x5bc   :  { %v1112_v56 = vadd.f32 %v1111_v44, %v2361_v37 }
 0x5be   :  { %1709 = vtanh.f32 %v1112_v56 }
 0x5c4   :  { %v1710_v59 = vpop.eup %1709 }
 0x5c5   :  { %v1114_v32 = vsub.f32 %v1029_v33, %v1710_v59  ;;  %v1623_v33 = vld [vmem:[%s2350_s7 + $0x8] sm:$0xff] }
 0x5c6   :  { %1279 = vmatpush.bf16.msrb.mxu1 %v1623_v33 }
 0x5c7   :  { %v1115_v11 = vmul.f32 %v1114_v32, %v1108_v20 }
 0x5c9   :  { %v2292_v36 = vadd.f32 %v1710_v59, %v1115_v11 }
 0x5ca   :  { %1280 = vmatpush.bf16.msrb.mxu1 %v1622_v30 }
 0x5cb   :  { %v1117_v38 = vpack.c.bf16 %v2292_v36, %v2292_v36 }
 0x5cd   :  { %1126 = vmatmul.bf16.vlgmr.msra.gmra.mxu2 %v1117_v38  ;;  %1139 = vmatmul.bf16.vlgmr.msra.gmra.mxu3 %v1117_v38 }
 0x5ce   :  { %1152 = vmatmul.bf16.vlgmr.msra.gmra.mxu0 %v1117_v38 }
 0x64b   :  { %v1153_v55 = vpop.f32.mrf.mxu0 }
 0x64c   :  { %v1197_v31 = vadd.f32 %v1721_v19, %v1153_v55 }
 0x650   :  { %v1127_v7 = vpop.f32.mrf.mxu2  ;;  %v1140_v14 = vpop.f32.mrf.mxu3 }
 0x651   :  { %v1157_v34 = vadd.f32 %v1127_v7, %v2362_v28  ;;  %v1158_v48 = vadd.f32 %v1140_v14, %v2363_v42 }
 0x653   :  { %v1537_v54 = vmul.f32 -1.442695, %v1157_v34  ;;  %v1538_v61 = vmul.f32 -1.442695, %v1158_v48  ;;  %v1155_v23 = vpop.f32.mrf.mxu0 }
 0x655   :  { %1711 = vpow2.f32 %v1537_v54 }
 0x656   :  { %1713 = vpow2.f32 %v1538_v61 }
 0x658   :  { %v1129_v46 = vpop.f32.mrf.mxu2  ;;  %v1142_v63 = vpop.f32.mrf.mxu3 }
 0x65b   :  { %v1712_v9 = vpop.eup %1711 }
 0x65c   :  { %v1714_v13 = vpop.eup %1713  ;;  %v1165_v39 = vadd.f32 1.0, %v1712_v9 }
 0x65d   :  { %v1166_v52 = vadd.f32 1.0, %v1714_v13 }
 0x65e   :  { %1715 = vrcp.f32 %v1165_v39  ;;  %v1178_v17 = vand.u32 2147483648, %v1165_v39  ;;  %v1176_v50 = vand.u32 2147483647, %v1165_v39  ;;  %vm1172_vm13 = vweird.f32 %v1165_v39 }
 0x65f   :  { %1717 = vrcp.f32 %v1166_v52  ;;  %v1193_v1 = vand.u32 2147483648, %v1166_v52  ;;  %vm1187_vm2 = vweird.f32 %v1166_v52  ;;  %v1191_v10 = vand.u32 2147483647, %v1166_v52 }
 0x660   :  { %v1179_v47 = vor.u32 1.1754944e-38, %v1178_v17  ;;  %vm1177_vm15 = vcmp.eq.f32.partialorder %v1176_v50, 8.507059e+37 }
 0x661   :  { %v1194_v40 = vor.u32 1.1754944e-38, %v1193_v1  ;;  %vm1192_vm4 = vcmp.eq.f32.partialorder %v1191_v10, 8.507059e+37 }
 0x664   :  { %v1716_v62 = vpop.eup %1715 }
 0x665   :  { %v1718_v4 = vpop.eup %1717  ;;  %v1168_v22 = vmul.f32 %v1716_v62, %v1165_v39  ;;  %vm1173_vm12 = vweird.f32 %v1716_v62 }
 0x666   :  { %v1183_v29 = vmul.f32 %v1718_v4, %v1166_v52  ;;  %vm1174_vm14 = vmor %vm1172_vm13, %vm1173_vm12  ;;  %vm1188_vm1 = vweird.f32 %v1718_v4 }
 0x667   :  { %v1169_v27 = vsub.f32 1.0, %v1168_v22  ;;  %vm1189_vm3 = vmor %vm1187_vm2, %vm1188_vm1 }
 0x668   :  { %v1184_v0 = vsub.f32 1.0, %v1183_v29 }
 0x669   :  { %v1170_v15 = vmul.f32 %v1716_v62, %v1169_v27 }
 0x66a   :  { %v1185_v21 = vmul.f32 %v1718_v4, %v1184_v0 }
 0x66b   :  { %v1171_v12 = vadd.f32 %v1716_v62, %v1170_v15 }
 0x66c   :  { %v1186_v25 = vadd.f32 %v1718_v4, %v1185_v21 }
 0x66d   :  { %v1175_v43 = vsel %vm1174_vm14, %v1716_v62, %v1171_v12 }
 0x66e   :  { %v1180_v2 = vsel %vm1177_vm15, %v1179_v47, %v1175_v43  ;;  %v1190_v26 = vsel %vm1189_vm3, %v1718_v4, %v1186_v25 }
 0x66f   :  { %v1198_v18 = vmul.f32 %v1197_v31, %v1180_v2  ;;  %v1195_v56 = vsel %vm1192_vm4, %v1194_v40, %v1190_v26 }
 0x671   :  { %v1199_v49 = vadd.f32 %v1198_v18, %v2364_v58 }
 0x673   :  { %1719 = vtanh.f32 %v1199_v49 }
 0x679   :  { %v1720_v44 = vpop.eup %1719 }
 0x67a   :  { %v1201_v37 = vsub.f32 %v2292_v36, %v1720_v44  ;;  %v1640_v36 = vld [vmem:[%s2353_s10] ss:$0 sm:$0xff] }
 0x67c   :  { %v1202_v60 = vmul.f32 %v1201_v37, %v1195_v56 }
 0x67e   :  { %v1203_v5 = vadd.f32 %v1720_v44, %v1202_v60 }
 0x680   :  { %v1204_v8 = vpack.c.bf16 %v1203_v5, %v1203_v5 }
 0x682   :  { %1281 = vmatmul.bf16.vlgmr.msrb.gmra.mxu1 %v1204_v8 }
 0x6ff   :  { %v1282_v59 = vpop.f32.mrf.mxu1 }
 0x700   :  { %v1283_v6 = vadd.f32 %v1639_v35, %v1282_v59 }
 0x702   :  { %v1286_v32 = vmax.f32 %v1283_v6, 0.0 }
 0x704   :  { %v1287_v20 = vpack.c.bf16 %v1286_v32, %v1286_v32 }
 0x706   :  { %1579 = vmatmul.msk.bf16.vlgmr.msrb.gmra.mxu2 %vm245_vm0, %v1287_v20 }
 0x707   :  { %v1284_v11 = vpop.f32.mrf.mxu1 }
 0x789   :  { %v1320_v38 = vpop.f32.mrf.mxu2 }
 0x78a   :  { %v1321_v41 = vadd.f32 %v1640_v36, %v1320_v38 }
 0x78c   :  { %1325 = vst.msk [vmem:[#allocation5] sm:$0xff] %vm1324_vm5, %v1321_v41 }
 0x78d   :  { %1336 = dma.vmem_to_hbm [thread:$0]  %s1332_s30, 128, %s1334_s14, [#allocation4]  }
 0x791   :  { %v1322_v45 = vpop.f32.mrf.mxu2 }
 0x792   :  { %1772 = dma.done.wait [#allocation4], 128  }
 0x793   :  { %1773 = vsyncadd [#allocation4], 4294967168 }
 0x794   :  { %1341 = vsyncpa [#allocation3], 1 }
 0x795   :  { %1342 = vsyncpa [#allocation4], 1 }

</bundles_post_ra>
